<compile_context>
chip_gen: v7x
topology: tpu7x:2x2x1
jax: 0.10.0
libtpu: 0.0.40
codegen_flags: <defaults>
</compile_context>

<pallas_src>
import jax
import jax.numpy as jnp
import numpy as np
from jax.experimental import pallas as pl
from jax.experimental.pallas import tpu as pltpu

GATE_PAD = 128   # lane-aligned width of each GRU gate block
OUT_PAD = 128    # lane-aligned width of the fc output block


# ----------------------------------------------------------------------------- kernel
def seq2seq_kernel(x_ref,                                    # (T, NB, I) time-major block
                   ewih_ref, ewhh_ref, ebias_ref, ebhhn_ref,  # encoder GRU (padded)
                   dw_ref, dbias_ref, dbhhn_ref,              # decoder GRU (padded, fused W)
                   fcw_ref, fcb_ref,                          # fc (padded rows/cols)
                   out_ref):                                  # (NB, OUT_PAD)
    T, NB, I = x_ref.shape
    GP = ewhh_ref.shape[0]            # padded hidden width (128)

    # Hoist every weight/bias load out of the recurrence / tail.
    ewih = ewih_ref[...]
    ewhh = ewhh_ref[...]
    ebias = ebias_ref[...]
    dw = dw_ref[...]
    dbias = dbias_ref[...]
    fcw = fcw_ref[...]
    fcb = fcb_ref[...]
    # Hoist the (1, GP) -> (NB, GP) broadcasts out of the loop (JAX does not CSE them).
    ebhhn = jnp.broadcast_to(ebhhn_ref[...], (NB, GP))
    dbhhn = jnp.broadcast_to(dbhhn_ref[...], (NB, GP))

    # Encoder input projection hoisted off the critical path: one big MXU matmul.
    x2 = x_ref[...].reshape(T * NB, I)
    gi_all = jnp.dot(x2, ewih, preferred_element_type=jnp.float32) + ebias   # (T*NB, 3GP)

    def gru_cell(gi, gh, h, bhh_n):
        # gi already contains b_ih (all gates) + b_hh (r/z gates).
        rz = jax.nn.sigmoid(gi[:, : 2 * GP] + gh[:, : 2 * GP])              # one EUP region
        r = rz[:, :GP]
        z = rz[:, GP:]
        n = jnp.tanh(gi[:, 2 * GP:] + r * (gh[:, 2 * GP:] + bhh_n))
        return (1.0 - z) * n + z * h

    # Encoder recurrence, statically unrolled (T is small & static); padded lanes of h
    # stay exactly zero throughout (weights/biases are zero in padded lanes/rows).
    h = jnp.zeros((NB, GP), jnp.float32)
    for t in range(T):
        gh = jnp.dot(h, ewhh, preferred_element_type=jnp.float32)           # (NB, 3GP)
        h = gru_cell(gi_all[t * NB:(t + 1) * NB, :], gh, h, ebhhn)

    # Decoder: one step, input = h_n, initial hidden = h_n. Both projections share the
    # operand h, so they are fused into a single (NB, GP) x (GP, 6GP) matmul.
    gigh = jnp.dot(h, dw, preferred_element_type=jnp.float32)               # (NB, 6GP)
    gi_d = gigh[:, : 3 * GP] + dbias
    gh_d = gigh[:, 3 * GP:]
    h_dec = gru_cell(gi_d, gh_d, h, dbhhn)

    # fc + ReLU; OUT_PAD-wide result -> unmasked lane-dense store.
    y = jnp.dot(h_dec, fcw, preferred_element_type=jnp.float32) + fcb
    out_ref[...] = jnp.maximum(y, 0.0)


# ----------------------------------------------------------------------------- wrapper
def gru_encoder_decoder_forward(x, kparams, *, block=8):
    """x: (N, T, input_size). Each sequence is an independent B==1 forward of the
    PyTorch module. Returns (N, 1, 1, output_size) with out[n] == module(x[n:n+1])."""
    N, T, I = x.shape
    GP = kparams["enc_whh"].shape[0]
    OP = kparams["fc_w"].shape[1]
    O = kparams["out_size"]

    n_pad = ((N + block - 1) // block) * block
    x_tm = jnp.transpose(x.astype(jnp.float32), (1, 0, 2))        # (T, N, I) time-major
    if n_pad != N:
        x_tm = jnp.pad(x_tm, ((0, 0), (0, n_pad - N), (0, 0)))

    def wspec(arr):  # whole-array, grid-invariant (stays resident in VMEM)
        return pl.BlockSpec(arr.shape, lambda s: (0, 0))

    out = pl.pallas_call(
        seq2seq_kernel,
        out_shape=jax.ShapeDtypeStruct((n_pad, OP), jnp.float32),
        grid=(n_pad // block,),
        in_specs=[
            pl.BlockSpec((T, block, I), lambda s: (0, s, 0)),     # x, per sequence-block
            wspec(kparams["enc_wih"]), wspec(kparams["enc_whh"]),
            wspec(kparams["enc_bias"]), wspec(kparams["enc_bhhn"]),
            wspec(kparams["dec_w"]), wspec(kparams["dec_bias"]), wspec(kparams["dec_bhhn"]),
            wspec(kparams["fc_w"]), wspec(kparams["fc_b"]),
        ],
        out_specs=pl.BlockSpec((block, OP), lambda s: (s, 0)),
        compiler_params=pltpu.CompilerParams(dimension_semantics=("parallel",)),
    )(
        x_tm,
        kparams["enc_wih"], kparams["enc_whh"], kparams["enc_bias"], kparams["enc_bhhn"],
        kparams["dec_w"], kparams["dec_bias"], kparams["dec_bhhn"],
        kparams["fc_w"], kparams["fc_b"],
    )
    return out[:N, :O].reshape(N, 1, 1, O)


# ----------------------------------------------------------------------------- params
def make_torch_params(key, input_size, hidden_size, output_size):
    """PyTorch-layout parameters (gate order [r|z|n]) with uniform(-1/sqrt(H), 1/sqrt(H)) init."""
    H, I, O = hidden_size, input_size, output_size
    assert O == H, "decoder re-feed requires output_size == hidden_size (PyTorch B==1 quirk)"
    bound = 1.0 / np.sqrt(H)
    ks = jax.random.split(key, 10)
    u = lambda k, s: jax.random.uniform(k, s, jnp.float32, -bound, bound)
    return {
        "enc_w_ih": u(ks[0], (3 * H, I)), "enc_w_hh": u(ks[1], (3 * H, H)),
        "enc_b_ih": u(ks[2], (3 * H,)),   "enc_b_hh": u(ks[3], (3 * H,)),
        "dec_w_ih": u(ks[4], (3 * H, O)), "dec_w_hh": u(ks[5], (3 * H, H)),
        "dec_b_ih": u(ks[6], (3 * H,)),   "dec_b_hh": u(ks[7], (3 * H,)),
        "fc_w":     u(ks[8], (O, H)),     "fc_b":     u(ks[9], (O,)),
    }


def _gate_pad_cols(w_t, H, GP):
    """(F, 3H) gate order [r|z|n] -> (F, 3*GP): each gate in its own GP-lane block."""
    F = w_t.shape[0]
    out = jnp.zeros((F, 3 * GP), jnp.float32)
    for g in range(3):
        out = out.at[:, g * GP: g * GP + H].set(w_t[:, g * H:(g + 1) * H])
    return out


def _row_pad(w, rows):
    return jnp.pad(w, ((0, rows - w.shape[0]), (0, 0)))


def prepare_kernel_params(tp, gate_pad=GATE_PAD, out_pad=OUT_PAD):
    """Transpose + gate-align-pad PyTorch params for the kernel, fold the r/z halves of
    b_hh into the precomputed input-side bias, fuse the decoder's two weight matrices,
    and lane-pad the fc output block."""
    H = tp["enc_w_hh"].shape[1]
    O = tp["fc_w"].shape[0]
    GP = gate_pad
    assert H <= GP and O <= out_pad

    def gru(prefix, pad_in_rows=None):
        wih = _gate_pad_cols(tp[prefix + "_w_ih"].T.astype(jnp.float32), H, GP)
        if pad_in_rows is not None:
            wih = _row_pad(wih, pad_in_rows)           # decoder input is the padded h
        whh = _row_pad(_gate_pad_cols(tp[prefix + "_w_hh"].T.astype(jnp.float32), H, GP), GP)
        bih_p = _gate_pad_cols(tp[prefix + "_b_ih"][None, :].astype(jnp.float32), H, GP)
        bhh_p = _gate_pad_cols(tp[prefix + "_b_hh"][None, :].astype(jnp.float32), H, GP)
        bias_pre = bih_p.at[:, : 2 * GP].add(bhh_p[:, : 2 * GP])   # fold r/z hidden bias
        bhh_n = bhh_p[:, 2 * GP:]                                  # n-gate bias stays in-loop
        return wih, whh, bias_pre, bhh_n

    e_wih, e_whh, e_bias, e_bhhn = gru("enc")
    d_wih, d_whh, d_bias, d_bhhn = gru("dec", pad_in_rows=GP)
    dec_w = jnp.concatenate([d_wih, d_whh], axis=1)                # (GP, 6*GP) fused
    fc_w = jnp.zeros((GP, out_pad), jnp.float32).at[:H, :O].set(
        tp["fc_w"].T.astype(jnp.float32))                          # (GP, OUT_PAD)
    fc_b = jnp.zeros((1, out_pad), jnp.float32).at[0, :O].set(
        tp["fc_b"].astype(jnp.float32))                            # (1, OUT_PAD)
    return dict(enc_wih=e_wih, enc_whh=e_whh, enc_bias=e_bias, enc_bhhn=e_bhhn,
                dec_w=dec_w, dec_bias=d_bias, dec_bhhn=d_bhhn,
                fc_w=fc_w, fc_b=fc_b, out_size=O)


# ----------------------------------------------------------------------------- reference
def reference_forward(x, tp):
    """Pure-JAX mirror of the PyTorch module, vmapped over independent B==1 sequences."""
    H = tp["enc_w_hh"].shape[1]

    def gru_step(x_t, h, w_ih, w_hh, b_ih, b_hh):
        gi = x_t @ w_ih.T + b_ih
        gh = h @ w_hh.T + b_hh
        r = jax.nn.sigmoid(gi[..., :H] + gh[..., :H])
        z = jax.nn.sigmoid(gi[..., H:2 * H] + gh[..., H:2 * H])
        n = jnp.tanh(gi[..., 2 * H:] + r * gh[..., 2 * H:])
        return (1.0 - z) * n + z * h

    N, T, _ = x.shape
    h = jnp.zeros((N, H), jnp.float32)
    for t in range(T):
        h = gru_step(x[:, t, :], h, tp["enc_w_ih"], tp["enc_w_hh"],
                     tp["enc_b_ih"], tp["enc_b_hh"])
    h_dec = gru_step(h, h, tp["dec_w_ih"], tp["dec_w_hh"], tp["dec_b_ih"], tp["dec_b_hh"])
    y = h_dec @ tp["fc_w"].T + tp["fc_b"]
    return jnp.maximum(y, 0.0).reshape(N, 1, 1, -1)


# ----------------------------------------------------------------------------- main
if __name__ == "__main__":
    input_size, hidden_size, output_size = 16, 32, 32   # output_size must == hidden_size
    N, T = 16, 8                                         # 16 independent sequences, seq len 8

    key = jax.random.PRNGKey(0)
    kx, kp = jax.random.split(key)
    x = jax.random.normal(kx, (N, T, input_size), jnp.float32)

    torch_params = make_torch_params(kp, input_size, hidden_size, output_size)
    kparams = prepare_kernel_params(torch_params)

    out = gru_encoder_decoder_forward(x, kparams)
    out = jax.block_until_ready(out)

    ref = reference_forward(x, torch_params)
    np.testing.assert_allclose(np.asarray(out), np.asarray(ref), rtol=1e-5, atol=1e-5)

    print("KERNEL_OK")
</pallas_src>

<mosaic_0001>
module attributes {stable_mosaic.version = 11 : i64} {
  func.func @seq2seq_kernel(%arg0: i32, %arg1: memref<8x8x16xf32, #tpu.memory_space<vmem>>, %arg2: memref<16x384xf32, #tpu.memory_space<vmem>>, %arg3: memref<128x384xf32, #tpu.memory_space<vmem>>, %arg4: memref<1x384xf32, #tpu.memory_space<vmem>>, %arg5: memref<1x128xf32, #tpu.memory_space<vmem>>, %arg6: memref<128x768xf32, #tpu.memory_space<vmem>>, %arg7: memref<1x384xf32, #tpu.memory_space<vmem>>, %arg8: memref<1x128xf32, #tpu.memory_space<vmem>>, %arg9: memref<128x128xf32, #tpu.memory_space<vmem>>, %arg10: memref<1x128xf32, #tpu.memory_space<vmem>>, %arg11: memref<8x128xf32, #tpu.memory_space<vmem>>) attributes {dimension_semantics = [#tpu.dimension_semantics<parallel>], iteration_bounds = array<i64: 2>, scalar_prefetch = 0 : i64, scratch_operands = 0 : i64, tpu.core_type = #tpu.core_type<tc>, window_params = [{transform_indices = @transform_0, window_bounds = array<i64: 8, 8, 16>}, {pipeline_mode = #tpu.pipeline_mode<synchronous>, transform_indices = @transform_1, window_bounds = array<i64: 16, 384>}, {pipeline_mode = #tpu.pipeline_mode<synchronous>, transform_indices = @transform_2, window_bounds = array<i64: 128, 384>}, {pipeline_mode = #tpu.pipeline_mode<synchronous>, transform_indices = @transform_3, window_bounds = array<i64: 1, 384>}, {pipeline_mode = #tpu.pipeline_mode<synchronous>, transform_indices = @transform_4, window_bounds = array<i64: 1, 128>}, {pipeline_mode = #tpu.pipeline_mode<synchronous>, transform_indices = @transform_5, window_bounds = array<i64: 128, 768>}, {pipeline_mode = #tpu.pipeline_mode<synchronous>, transform_indices = @transform_6, window_bounds = array<i64: 1, 384>}, {pipeline_mode = #tpu.pipeline_mode<synchronous>, transform_indices = @transform_7, window_bounds = array<i64: 1, 128>}, {pipeline_mode = #tpu.pipeline_mode<synchronous>, transform_indices = @transform_8, window_bounds = array<i64: 128, 128>}, {pipeline_mode = #tpu.pipeline_mode<synchronous>, transform_indices = @transform_9, window_bounds = array<i64: 1, 128>}, {transform_indices = @transform_10, window_bounds = array<i64: 8, 128>}]} {
    %c0 = arith.constant 0 : index
    %c0_0 = arith.constant 0 : index
    %0 = vector.load %arg2[%c0, %c0_0] : memref<16x384xf32, #tpu.memory_space<vmem>>, vector<16x384xf32>
    %c0_1 = arith.constant 0 : index
    %c0_2 = arith.constant 0 : index
    %1 = vector.load %arg3[%c0_1, %c0_2] : memref<128x384xf32, #tpu.memory_space<vmem>>, vector<128x384xf32>
    %c0_3 = arith.constant 0 : index
    %c0_4 = arith.constant 0 : index
    %2 = vector.load %arg4[%c0_3, %c0_4] : memref<1x384xf32, #tpu.memory_space<vmem>>, vector<1x384xf32>
    %c0_5 = arith.constant 0 : index
    %c0_6 = arith.constant 0 : index
    %3 = vector.load %arg6[%c0_5, %c0_6] : memref<128x768xf32, #tpu.memory_space<vmem>>, vector<128x768xf32>
    %c0_7 = arith.constant 0 : index
    %c0_8 = arith.constant 0 : index
    %4 = vector.load %arg7[%c0_7, %c0_8] : memref<1x384xf32, #tpu.memory_space<vmem>>, vector<1x384xf32>
    %c0_9 = arith.constant 0 : index
    %c0_10 = arith.constant 0 : index
    %5 = vector.load %arg9[%c0_9, %c0_10] : memref<128x128xf32, #tpu.memory_space<vmem>>, vector<128x128xf32>
    %c0_11 = arith.constant 0 : index
    %c0_12 = arith.constant 0 : index
    %6 = vector.load %arg10[%c0_11, %c0_12] : memref<1x128xf32, #tpu.memory_space<vmem>>, vector<1x128xf32>
    %c0_13 = arith.constant 0 : index
    %c0_14 = arith.constant 0 : index
    %7 = vector.load %arg5[%c0_13, %c0_14] : memref<1x128xf32, #tpu.memory_space<vmem>>, vector<1x128xf32>
    %8 = vector.shape_cast %7 : vector<1x128xf32> to vector<1x128xf32>
    %9 = vector.broadcast %8 : vector<1x128xf32> to vector<8x128xf32>
    %c0_15 = arith.constant 0 : index
    %c0_16 = arith.constant 0 : index
    %10 = vector.load %arg8[%c0_15, %c0_16] : memref<1x128xf32, #tpu.memory_space<vmem>>, vector<1x128xf32>
    %11 = vector.shape_cast %10 : vector<1x128xf32> to vector<1x128xf32>
    %12 = vector.broadcast %11 : vector<1x128xf32> to vector<8x128xf32>
    %c0_17 = arith.constant 0 : index
    %c0_18 = arith.constant 0 : index
    %c0_19 = arith.constant 0 : index
    %13 = vector.load %arg1[%c0_17, %c0_18, %c0_19] : memref<8x8x16xf32, #tpu.memory_space<vmem>>, vector<8x8x16xf32>
    %14 = vector.shape_cast %13 : vector<8x8x16xf32> to vector<64x16xf32>
    %cst = arith.constant dense<0.000000e+00> : vector<64x384xf32>
    %15 = tpu.matmul %14, %0, %cst {dimension_numbers = #tpu.dot_dimension_numbers<[1], [0], [0], [1], [0, 0, 1, 1], [], []>} : vector<64x16xf32>, vector<16x384xf32>, vector<64x384xf32> -> vector<64x384xf32>
    %16 = vector.broadcast %2 : vector<1x384xf32> to vector<64x384xf32>
    %17 = arith.addf %15, %16 : vector<64x384xf32>
    %cst_20 = arith.constant 0.000000e+00 : f32
    %18 = vector.broadcast %cst_20 : f32 to vector<8x128xf32>
    %cst_21 = arith.constant dense<0.000000e+00> : vector<8x384xf32>
    %19 = tpu.matmul %18, %1, %cst_21 {dimension_numbers = #tpu.dot_dimension_numbers<[1], [0], [0], [1], [0, 0, 1, 1], [], []>} : vector<8x128xf32>, vector<128x384xf32>, vector<8x384xf32> -> vector<8x384xf32>
    %20 = vector.extract_strided_slice %17 {offsets = [0, 0], sizes = [8, 384], strides = [1, 1]} : vector<64x384xf32> to vector<8x384xf32>
    %21 = vector.extract_strided_slice %20 {offsets = [0, 0], sizes = [8, 256], strides = [1, 1]} : vector<8x384xf32> to vector<8x256xf32>
    %22 = vector.extract_strided_slice %19 {offsets = [0, 0], sizes = [8, 256], strides = [1, 1]} : vector<8x384xf32> to vector<8x256xf32>
    %23 = arith.addf %21, %22 : vector<8x256xf32>
    %24 = arith.negf %23 : vector<8x256xf32>
    %25 = math.exp %24 : vector<8x256xf32>
    %cst_22 = arith.constant 1.000000e+00 : f32
    %26 = vector.broadcast %cst_22 : f32 to vector<8x256xf32>
    %27 = arith.addf %26, %25 : vector<8x256xf32>
    %28 = arith.divf %26, %27 : vector<8x256xf32>
    %29 = vector.extract_strided_slice %28 {offsets = [0, 0], sizes = [8, 128], strides = [1, 1]} : vector<8x256xf32> to vector<8x128xf32>
    %30 = vector.extract_strided_slice %28 {offsets = [0, 128], sizes = [8, 128], strides = [1, 1]} : vector<8x256xf32> to vector<8x128xf32>
    %31 = vector.extract_strided_slice %20 {offsets = [0, 256], sizes = [8, 128], strides = [1, 1]} : vector<8x384xf32> to vector<8x128xf32>
    %32 = vector.extract_strided_slice %19 {offsets = [0, 256], sizes = [8, 128], strides = [1, 1]} : vector<8x384xf32> to vector<8x128xf32>
    %33 = arith.addf %32, %9 : vector<8x128xf32>
    %34 = arith.mulf %29, %33 : vector<8x128xf32>
    %35 = arith.addf %31, %34 : vector<8x128xf32>
    %36 = math.tanh %35 : vector<8x128xf32>
    %cst_23 = arith.constant 1.000000e+00 : f32
    %37 = vector.broadcast %cst_23 : f32 to vector<8x128xf32>
    %38 = arith.subf %37, %30 : vector<8x128xf32>
    %39 = arith.mulf %38, %36 : vector<8x128xf32>
    %40 = arith.mulf %30, %18 : vector<8x128xf32>
    %41 = arith.addf %39, %40 : vector<8x128xf32>
    %cst_24 = arith.constant dense<0.000000e+00> : vector<8x384xf32>
    %42 = tpu.matmul %41, %1, %cst_24 {dimension_numbers = #tpu.dot_dimension_numbers<[1], [0], [0], [1], [0, 0, 1, 1], [], []>} : vector<8x128xf32>, vector<128x384xf32>, vector<8x384xf32> -> vector<8x384xf32>
    %43 = vector.extract_strided_slice %17 {offsets = [8, 0], sizes = [8, 384], strides = [1, 1]} : vector<64x384xf32> to vector<8x384xf32>
    %44 = vector.extract_strided_slice %43 {offsets = [0, 0], sizes = [8, 256], strides = [1, 1]} : vector<8x384xf32> to vector<8x256xf32>
    %45 = vector.extract_strided_slice %42 {offsets = [0, 0], sizes = [8, 256], strides = [1, 1]} : vector<8x384xf32> to vector<8x256xf32>
    %46 = arith.addf %44, %45 : vector<8x256xf32>
    %47 = arith.negf %46 : vector<8x256xf32>
    %48 = math.exp %47 : vector<8x256xf32>
    %cst_25 = arith.constant 1.000000e+00 : f32
    %49 = vector.broadcast %cst_25 : f32 to vector<8x256xf32>
    %50 = arith.addf %49, %48 : vector<8x256xf32>
    %51 = arith.divf %49, %50 : vector<8x256xf32>
    %52 = vector.extract_strided_slice %51 {offsets = [0, 0], sizes = [8, 128], strides = [1, 1]} : vector<8x256xf32> to vector<8x128xf32>
    %53 = vector.extract_strided_slice %51 {offsets = [0, 128], sizes = [8, 128], strides = [1, 1]} : vector<8x256xf32> to vector<8x128xf32>
    %54 = vector.extract_strided_slice %43 {offsets = [0, 256], sizes = [8, 128], strides = [1, 1]} : vector<8x384xf32> to vector<8x128xf32>
    %55 = vector.extract_strided_slice %42 {offsets = [0, 256], sizes = [8, 128], strides = [1, 1]} : vector<8x384xf32> to vector<8x128xf32>
    %56 = arith.addf %55, %9 : vector<8x128xf32>
    %57 = arith.mulf %52, %56 : vector<8x128xf32>
    %58 = arith.addf %54, %57 : vector<8x128xf32>
    %59 = math.tanh %58 : vector<8x128xf32>
    %cst_26 = arith.constant 1.000000e+00 : f32
    %60 = vector.broadcast %cst_26 : f32 to vector<8x128xf32>
    %61 = arith.subf %60, %53 : vector<8x128xf32>
    %62 = arith.mulf %61, %59 : vector<8x128xf32>
    %63 = arith.mulf %53, %41 : vector<8x128xf32>
    %64 = arith.addf %62, %63 : vector<8x128xf32>
    %cst_27 = arith.constant dense<0.000000e+00> : vector<8x384xf32>
    %65 = tpu.matmul %64, %1, %cst_27 {dimension_numbers = #tpu.dot_dimension_numbers<[1], [0], [0], [1], [0, 0, 1, 1], [], []>} : vector<8x128xf32>, vector<128x384xf32>, vector<8x384xf32> -> vector<8x384xf32>
    %66 = vector.extract_strided_slice %17 {offsets = [16, 0], sizes = [8, 384], strides = [1, 1]} : vector<64x384xf32> to vector<8x384xf32>
    %67 = vector.extract_strided_slice %66 {offsets = [0, 0], sizes = [8, 256], strides = [1, 1]} : vector<8x384xf32> to vector<8x256xf32>
    %68 = vector.extract_strided_slice %65 {offsets = [0, 0], sizes = [8, 256], strides = [1, 1]} : vector<8x384xf32> to vector<8x256xf32>
    %69 = arith.addf %67, %68 : vector<8x256xf32>
    %70 = arith.negf %69 : vector<8x256xf32>
    %71 = math.exp %70 : vector<8x256xf32>
    %cst_28 = arith.constant 1.000000e+00 : f32
    %72 = vector.broadcast %cst_28 : f32 to vector<8x256xf32>
    %73 = arith.addf %72, %71 : vector<8x256xf32>
    %74 = arith.divf %72, %73 : vector<8x256xf32>
    %75 = vector.extract_strided_slice %74 {offsets = [0, 0], sizes = [8, 128], strides = [1, 1]} : vector<8x256xf32> to vector<8x128xf32>
    %76 = vector.extract_strided_slice %74 {offsets = [0, 128], sizes = [8, 128], strides = [1, 1]} : vector<8x256xf32> to vector<8x128xf32>
    %77 = vector.extract_strided_slice %66 {offsets = [0, 256], sizes = [8, 128], strides = [1, 1]} : vector<8x384xf32> to vector<8x128xf32>
    %78 = vector.extract_strided_slice %65 {offsets = [0, 256], sizes = [8, 128], strides = [1, 1]} : vector<8x384xf32> to vector<8x128xf32>
    %79 = arith.addf %78, %9 : vector<8x128xf32>
    %80 = arith.mulf %75, %79 : vector<8x128xf32>
    %81 = arith.addf %77, %80 : vector<8x128xf32>
    %82 = math.tanh %81 : vector<8x128xf32>
    %cst_29 = arith.constant 1.000000e+00 : f32
    %83 = vector.broadcast %cst_29 : f32 to vector<8x128xf32>
    %84 = arith.subf %83, %76 : vector<8x128xf32>
    %85 = arith.mulf %84, %82 : vector<8x128xf32>
    %86 = arith.mulf %76, %64 : vector<8x128xf32>
    %87 = arith.addf %85, %86 : vector<8x128xf32>
    %cst_30 = arith.constant dense<0.000000e+00> : vector<8x384xf32>
    %88 = tpu.matmul %87, %1, %cst_30 {dimension_numbers = #tpu.dot_dimension_numbers<[1], [0], [0], [1], [0, 0, 1, 1], [], []>} : vector<8x128xf32>, vector<128x384xf32>, vector<8x384xf32> -> vector<8x384xf32>
    %89 = vector.extract_strided_slice %17 {offsets = [24, 0], sizes = [8, 384], strides = [1, 1]} : vector<64x384xf32> to vector<8x384xf32>
    %90 = vector.extract_strided_slice %89 {offsets = [0, 0], sizes = [8, 256], strides = [1, 1]} : vector<8x384xf32> to vector<8x256xf32>
    %91 = vector.extract_strided_slice %88 {offsets = [0, 0], sizes = [8, 256], strides = [1, 1]} : vector<8x384xf32> to vector<8x256xf32>
    %92 = arith.addf %90, %91 : vector<8x256xf32>
    %93 = arith.negf %92 : vector<8x256xf32>
    %94 = math.exp %93 : vector<8x256xf32>
    %cst_31 = arith.constant 1.000000e+00 : f32
    %95 = vector.broadcast %cst_31 : f32 to vector<8x256xf32>
    %96 = arith.addf %95, %94 : vector<8x256xf32>
    %97 = arith.divf %95, %96 : vector<8x256xf32>
    %98 = vector.extract_strided_slice %97 {offsets = [0, 0], sizes = [8, 128], strides = [1, 1]} : vector<8x256xf32> to vector<8x128xf32>
    %99 = vector.extract_strided_slice %97 {offsets = [0, 128], sizes = [8, 128], strides = [1, 1]} : vector<8x256xf32> to vector<8x128xf32>
    %100 = vector.extract_strided_slice %89 {offsets = [0, 256], sizes = [8, 128], strides = [1, 1]} : vector<8x384xf32> to vector<8x128xf32>
    %101 = vector.extract_strided_slice %88 {offsets = [0, 256], sizes = [8, 128], strides = [1, 1]} : vector<8x384xf32> to vector<8x128xf32>
    %102 = arith.addf %101, %9 : vector<8x128xf32>
    %103 = arith.mulf %98, %102 : vector<8x128xf32>
    %104 = arith.addf %100, %103 : vector<8x128xf32>
    %105 = math.tanh %104 : vector<8x128xf32>
    %cst_32 = arith.constant 1.000000e+00 : f32
    %106 = vector.broadcast %cst_32 : f32 to vector<8x128xf32>
    %107 = arith.subf %106, %99 : vector<8x128xf32>
    %108 = arith.mulf %107, %105 : vector<8x128xf32>
    %109 = arith.mulf %99, %87 : vector<8x128xf32>
    %110 = arith.addf %108, %109 : vector<8x128xf32>
    %cst_33 = arith.constant dense<0.000000e+00> : vector<8x384xf32>
    %111 = tpu.matmul %110, %1, %cst_33 {dimension_numbers = #tpu.dot_dimension_numbers<[1], [0], [0], [1], [0, 0, 1, 1], [], []>} : vector<8x128xf32>, vector<128x384xf32>, vector<8x384xf32> -> vector<8x384xf32>
    %112 = vector.extract_strided_slice %17 {offsets = [32, 0], sizes = [8, 384], strides = [1, 1]} : vector<64x384xf32> to vector<8x384xf32>
    %113 = vector.extract_strided_slice %112 {offsets = [0, 0], sizes = [8, 256], strides = [1, 1]} : vector<8x384xf32> to vector<8x256xf32>
    %114 = vector.extract_strided_slice %111 {offsets = [0, 0], sizes = [8, 256], strides = [1, 1]} : vector<8x384xf32> to vector<8x256xf32>
    %115 = arith.addf %113, %114 : vector<8x256xf32>
    %116 = arith.negf %115 : vector<8x256xf32>
    %117 = math.exp %116 : vector<8x256xf32>
    %cst_34 = arith.constant 1.000000e+00 : f32
    %118 = vector.broadcast %cst_34 : f32 to vector<8x256xf32>
    %119 = arith.addf %118, %117 : vector<8x256xf32>
    %120 = arith.divf %118, %119 : vector<8x256xf32>
    %121 = vector.extract_strided_slice %120 {offsets = [0, 0], sizes = [8, 128], strides = [1, 1]} : vector<8x256xf32> to vector<8x128xf32>
    %122 = vector.extract_strided_slice %120 {offsets = [0, 128], sizes = [8, 128], strides = [1, 1]} : vector<8x256xf32> to vector<8x128xf32>
    %123 = vector.extract_strided_slice %112 {offsets = [0, 256], sizes = [8, 128], strides = [1, 1]} : vector<8x384xf32> to vector<8x128xf32>
    %124 = vector.extract_strided_slice %111 {offsets = [0, 256], sizes = [8, 128], strides = [1, 1]} : vector<8x384xf32> to vector<8x128xf32>
    %125 = arith.addf %124, %9 : vector<8x128xf32>
    %126 = arith.mulf %121, %125 : vector<8x128xf32>
    %127 = arith.addf %123, %126 : vector<8x128xf32>
    %128 = math.tanh %127 : vector<8x128xf32>
    %cst_35 = arith.constant 1.000000e+00 : f32
    %129 = vector.broadcast %cst_35 : f32 to vector<8x128xf32>
    %130 = arith.subf %129, %122 : vector<8x128xf32>
    %131 = arith.mulf %130, %128 : vector<8x128xf32>
    %132 = arith.mulf %122, %110 : vector<8x128xf32>
    %133 = arith.addf %131, %132 : vector<8x128xf32>
    %cst_36 = arith.constant dense<0.000000e+00> : vector<8x384xf32>
    %134 = tpu.matmul %133, %1, %cst_36 {dimension_numbers = #tpu.dot_dimension_numbers<[1], [0], [0], [1], [0, 0, 1, 1], [], []>} : vector<8x128xf32>, vector<128x384xf32>, vector<8x384xf32> -> vector<8x384xf32>
    %135 = vector.extract_strided_slice %17 {offsets = [40, 0], sizes = [8, 384], strides = [1, 1]} : vector<64x384xf32> to vector<8x384xf32>
    %136 = vector.extract_strided_slice %135 {offsets = [0, 0], sizes = [8, 256], strides = [1, 1]} : vector<8x384xf32> to vector<8x256xf32>
    %137 = vector.extract_strided_slice %134 {offsets = [0, 0], sizes = [8, 256], strides = [1, 1]} : vector<8x384xf32> to vector<8x256xf32>
    %138 = arith.addf %136, %137 : vector<8x256xf32>
    %139 = arith.negf %138 : vector<8x256xf32>
    %140 = math.exp %139 : vector<8x256xf32>
    %cst_37 = arith.constant 1.000000e+00 : f32
    %141 = vector.broadcast %cst_37 : f32 to vector<8x256xf32>
    %142 = arith.addf %141, %140 : vector<8x256xf32>
    %143 = arith.divf %141, %142 : vector<8x256xf32>
    %144 = vector.extract_strided_slice %143 {offsets = [0, 0], sizes = [8, 128], strides = [1, 1]} : vector<8x256xf32> to vector<8x128xf32>
    %145 = vector.extract_strided_slice %143 {offsets = [0, 128], sizes = [8, 128], strides = [1, 1]} : vector<8x256xf32> to vector<8x128xf32>
    %146 = vector.extract_strided_slice %135 {offsets = [0, 256], sizes = [8, 128], strides = [1, 1]} : vector<8x384xf32> to vector<8x128xf32>
    %147 = vector.extract_strided_slice %134 {offsets = [0, 256], sizes = [8, 128], strides = [1, 1]} : vector<8x384xf32> to vector<8x128xf32>
    %148 = arith.addf %147, %9 : vector<8x128xf32>
    %149 = arith.mulf %144, %148 : vector<8x128xf32>
    %150 = arith.addf %146, %149 : vector<8x128xf32>
    %151 = math.tanh %150 : vector<8x128xf32>
    %cst_38 = arith.constant 1.000000e+00 : f32
    %152 = vector.broadcast %cst_38 : f32 to vector<8x128xf32>
    %153 = arith.subf %152, %145 : vector<8x128xf32>
    %154 = arith.mulf %153, %151 : vector<8x128xf32>
    %155 = arith.mulf %145, %133 : vector<8x128xf32>
    %156 = arith.addf %154, %155 : vector<8x128xf32>
    %cst_39 = arith.constant dense<0.000000e+00> : vector<8x384xf32>
    %157 = tpu.matmul %156, %1, %cst_39 {dimension_numbers = #tpu.dot_dimension_numbers<[1], [0], [0], [1], [0, 0, 1, 1], [], []>} : vector<8x128xf32>, vector<128x384xf32>, vector<8x384xf32> -> vector<8x384xf32>
    %158 = vector.extract_strided_slice %17 {offsets = [48, 0], sizes = [8, 384], strides = [1, 1]} : vector<64x384xf32> to vector<8x384xf32>
    %159 = vector.extract_strided_slice %158 {offsets = [0, 0], sizes = [8, 256], strides = [1, 1]} : vector<8x384xf32> to vector<8x256xf32>
    %160 = vector.extract_strided_slice %157 {offsets = [0, 0], sizes = [8, 256], strides = [1, 1]} : vector<8x384xf32> to vector<8x256xf32>
    %161 = arith.addf %159, %160 : vector<8x256xf32>
    %162 = arith.negf %161 : vector<8x256xf32>
    %163 = math.exp %162 : vector<8x256xf32>
    %cst_40 = arith.constant 1.000000e+00 : f32
    %164 = vector.broadcast %cst_40 : f32 to vector<8x256xf32>
    %165 = arith.addf %164, %163 : vector<8x256xf32>
    %166 = arith.divf %164, %165 : vector<8x256xf32>
    %167 = vector.extract_strided_slice %166 {offsets = [0, 0], sizes = [8, 128], strides = [1, 1]} : vector<8x256xf32> to vector<8x128xf32>
    %168 = vector.extract_strided_slice %166 {offsets = [0, 128], sizes = [8, 128], strides = [1, 1]} : vector<8x256xf32> to vector<8x128xf32>
    %169 = vector.extract_strided_slice %158 {offsets = [0, 256], sizes = [8, 128], strides = [1, 1]} : vector<8x384xf32> to vector<8x128xf32>
    %170 = vector.extract_strided_slice %157 {offsets = [0, 256], sizes = [8, 128], strides = [1, 1]} : vector<8x384xf32> to vector<8x128xf32>
    %171 = arith.addf %170, %9 : vector<8x128xf32>
    %172 = arith.mulf %167, %171 : vector<8x128xf32>
    %173 = arith.addf %169, %172 : vector<8x128xf32>
    %174 = math.tanh %173 : vector<8x128xf32>
    %cst_41 = arith.constant 1.000000e+00 : f32
    %175 = vector.broadcast %cst_41 : f32 to vector<8x128xf32>
    %176 = arith.subf %175, %168 : vector<8x128xf32>
    %177 = arith.mulf %176, %174 : vector<8x128xf32>
    %178 = arith.mulf %168, %156 : vector<8x128xf32>
    %179 = arith.addf %177, %178 : vector<8x128xf32>
    %cst_42 = arith.constant dense<0.000000e+00> : vector<8x384xf32>
    %180 = tpu.matmul %179, %1, %cst_42 {dimension_numbers = #tpu.dot_dimension_numbers<[1], [0], [0], [1], [0, 0, 1, 1], [], []>} : vector<8x128xf32>, vector<128x384xf32>, vector<8x384xf32> -> vector<8x384xf32>
    %181 = vector.extract_strided_slice %17 {offsets = [56, 0], sizes = [8, 384], strides = [1, 1]} : vector<64x384xf32> to vector<8x384xf32>
    %182 = vector.extract_strided_slice %181 {offsets = [0, 0], sizes = [8, 256], strides = [1, 1]} : vector<8x384xf32> to vector<8x256xf32>
    %183 = vector.extract_strided_slice %180 {offsets = [0, 0], sizes = [8, 256], strides = [1, 1]} : vector<8x384xf32> to vector<8x256xf32>
    %184 = arith.addf %182, %183 : vector<8x256xf32>
    %185 = arith.negf %184 : vector<8x256xf32>
    %186 = math.exp %185 : vector<8x256xf32>
    %cst_43 = arith.constant 1.000000e+00 : f32
    %187 = vector.broadcast %cst_43 : f32 to vector<8x256xf32>
    %188 = arith.addf %187, %186 : vector<8x256xf32>
    %189 = arith.divf %187, %188 : vector<8x256xf32>
    %190 = vector.extract_strided_slice %189 {offsets = [0, 0], sizes = [8, 128], strides = [1, 1]} : vector<8x256xf32> to vector<8x128xf32>
    %191 = vector.extract_strided_slice %189 {offsets = [0, 128], sizes = [8, 128], strides = [1, 1]} : vector<8x256xf32> to vector<8x128xf32>
    %192 = vector.extract_strided_slice %181 {offsets = [0, 256], sizes = [8, 128], strides = [1, 1]} : vector<8x384xf32> to vector<8x128xf32>
    %193 = vector.extract_strided_slice %180 {offsets = [0, 256], sizes = [8, 128], strides = [1, 1]} : vector<8x384xf32> to vector<8x128xf32>
    %194 = arith.addf %193, %9 : vector<8x128xf32>
    %195 = arith.mulf %190, %194 : vector<8x128xf32>
    %196 = arith.addf %192, %195 : vector<8x128xf32>
    %197 = math.tanh %196 : vector<8x128xf32>
    %cst_44 = arith.constant 1.000000e+00 : f32
    %198 = vector.broadcast %cst_44 : f32 to vector<8x128xf32>
    %199 = arith.subf %198, %191 : vector<8x128xf32>
    %200 = arith.mulf %199, %197 : vector<8x128xf32>
    %201 = arith.mulf %191, %179 : vector<8x128xf32>
    %202 = arith.addf %200, %201 : vector<8x128xf32>
    %cst_45 = arith.constant dense<0.000000e+00> : vector<8x768xf32>
    %203 = tpu.matmul %202, %3, %cst_45 {dimension_numbers = #tpu.dot_dimension_numbers<[1], [0], [0], [1], [0, 0, 1, 1], [], []>} : vector<8x128xf32>, vector<128x768xf32>, vector<8x768xf32> -> vector<8x768xf32>
    %204 = vector.extract_strided_slice %203 {offsets = [0, 0], sizes = [8, 384], strides = [1, 1]} : vector<8x768xf32> to vector<8x384xf32>
    %205 = vector.broadcast %4 : vector<1x384xf32> to vector<8x384xf32>
    %206 = arith.addf %204, %205 : vector<8x384xf32>
    %207 = vector.extract_strided_slice %203 {offsets = [0, 384], sizes = [8, 384], strides = [1, 1]} : vector<8x768xf32> to vector<8x384xf32>
    %208 = vector.extract_strided_slice %206 {offsets = [0, 0], sizes = [8, 256], strides = [1, 1]} : vector<8x384xf32> to vector<8x256xf32>
    %209 = vector.extract_strided_slice %207 {offsets = [0, 0], sizes = [8, 256], strides = [1, 1]} : vector<8x384xf32> to vector<8x256xf32>
    %210 = arith.addf %208, %209 : vector<8x256xf32>
    %211 = arith.negf %210 : vector<8x256xf32>
    %212 = math.exp %211 : vector<8x256xf32>
    %cst_46 = arith.constant 1.000000e+00 : f32
    %213 = vector.broadcast %cst_46 : f32 to vector<8x256xf32>
    %214 = arith.addf %213, %212 : vector<8x256xf32>
    %215 = arith.divf %213, %214 : vector<8x256xf32>
    %216 = vector.extract_strided_slice %215 {offsets = [0, 0], sizes = [8, 128], strides = [1, 1]} : vector<8x256xf32> to vector<8x128xf32>
    %217 = vector.extract_strided_slice %215 {offsets = [0, 128], sizes = [8, 128], strides = [1, 1]} : vector<8x256xf32> to vector<8x128xf32>
    %218 = vector.extract_strided_slice %206 {offsets = [0, 256], sizes = [8, 128], strides = [1, 1]} : vector<8x384xf32> to vector<8x128xf32>
    %219 = vector.extract_strided_slice %207 {offsets = [0, 256], sizes = [8, 128], strides = [1, 1]} : vector<8x384xf32> to vector<8x128xf32>
    %220 = arith.addf %219, %12 : vector<8x128xf32>
    %221 = arith.mulf %216, %220 : vector<8x128xf32>
    %222 = arith.addf %218, %221 : vector<8x128xf32>
    %223 = math.tanh %222 : vector<8x128xf32>
    %cst_47 = arith.constant 1.000000e+00 : f32
    %224 = vector.broadcast %cst_47 : f32 to vector<8x128xf32>
    %225 = arith.subf %224, %217 : vector<8x128xf32>
    %226 = arith.mulf %225, %223 : vector<8x128xf32>
    %227 = arith.mulf %217, %202 : vector<8x128xf32>
    %228 = arith.addf %226, %227 : vector<8x128xf32>
    %cst_48 = arith.constant dense<0.000000e+00> : vector<8x128xf32>
    %229 = tpu.matmul %228, %5, %cst_48 {dimension_numbers = #tpu.dot_dimension_numbers<[1], [0], [0], [1], [0, 0, 1, 1], [], []>} : vector<8x128xf32>, vector<128x128xf32>, vector<8x128xf32> -> vector<8x128xf32>
    %230 = vector.broadcast %6 : vector<1x128xf32> to vector<8x128xf32>
    %231 = arith.addf %229, %230 : vector<8x128xf32>
    %cst_49 = arith.constant 0.000000e+00 : f32
    %232 = vector.broadcast %cst_49 : f32 to vector<8x128xf32>
    %233 = arith.maximumf %231, %232 : vector<8x128xf32>
    %c0_50 = arith.constant 0 : index
    %c0_51 = arith.constant 0 : index
    %234 = vector.load %arg11[%c0_50, %c0_51] : memref<8x128xf32, #tpu.memory_space<vmem>>, vector<8x128xf32>
    tpu.vector_store %arg11[%c0_50, %c0_51], %233 {strides = array<i32>} : memref<8x128xf32, #tpu.memory_space<vmem>>, vector<8x128xf32>,
    return
  }
  func.func @transform_0(%arg0: i32) -> (i32, i32, i32) {
    %c0_i32 = arith.constant 0 : i32
    %c0_i32_0 = arith.constant 0 : i32
    %c0_i32_1 = arith.constant 0 : i32
    return %c0_i32, %arg0, %c0_i32_0 : i32, i32, i32
  }
  func.func @transform_1(%arg0: i32) -> (i32, i32) {
    %c0_i32 = arith.constant 0 : i32
    %c0_i32_0 = arith.constant 0 : i32
    %c0_i32_1 = arith.constant 0 : i32
    return %c0_i32, %c0_i32_0 : i32, i32
  }
  func.func @transform_2(%arg0: i32) -> (i32, i32) {
    %c0_i32 = arith.constant 0 : i32
    %c0_i32_0 = arith.constant 0 : i32
    %c0_i32_1 = arith.constant 0 : i32
    return %c0_i32, %c0_i32_0 : i32, i32
  }
  func.func @transform_3(%arg0: i32) -> (i32, i32) {
    %c0_i32 = arith.constant 0 : i32
    %c0_i32_0 = arith.constant 0 : i32
    %c0_i32_1 = arith.constant 0 : i32
    return %c0_i32, %c0_i32_0 : i32, i32
  }
  func.func @transform_4(%arg0: i32) -> (i32, i32) {
    %c0_i32 = arith.constant 0 : i32
    %c0_i32_0 = arith.constant 0 : i32
    %c0_i32_1 = arith.constant 0 : i32
    return %c0_i32, %c0_i32_0 : i32, i32
  }
  func.func @transform_5(%arg0: i32) -> (i32, i32) {
    %c0_i32 = arith.constant 0 : i32
    %c0_i32_0 = arith.constant 0 : i32
    %c0_i32_1 = arith.constant 0 : i32
    return %c0_i32, %c0_i32_0 : i32, i32
  }
  func.func @transform_6(%arg0: i32) -> (i32, i32) {
    %c0_i32 = arith.constant 0 : i32
    %c0_i32_0 = arith.constant 0 : i32
    %c0_i32_1 = arith.constant 0 : i32
    return %c0_i32, %c0_i32_0 : i32, i32
  }
  func.func @transform_7(%arg0: i32) -> (i32, i32) {
    %c0_i32 = arith.constant 0 : i32
    %c0_i32_0 = arith.constant 0 : i32
    %c0_i32_1 = arith.constant 0 : i32
    return %c0_i32, %c0_i32_0 : i32, i32
  }
  func.func @transform_8(%arg0: i32) -> (i32, i32) {
    %c0_i32 = arith.constant 0 : i32
    %c0_i32_0 = arith.constant 0 : i32
    %c0_i32_1 = arith.constant 0 : i32
    return %c0_i32, %c0_i32_0 : i32, i32
  }
  func.func @transform_9(%arg0: i32) -> (i32, i32) {
    %c0_i32 = arith.constant 0 : i32
    %c0_i32_0 = arith.constant 0 : i32
    %c0_i32_1 = arith.constant 0 : i32
    return %c0_i32, %c0_i32_0 : i32, i32
  }
  func.func @transform_10(%arg0: i32) -> (i32, i32) {
    %c0_i32 = arith.constant 0 : i32
    %c0_i32_0 = arith.constant 0 : i32
    return %arg0, %c0_i32 : i32, i32
  }
}

</mosaic_0001>

<bundles_post_ra>
// kernel: tpu_custom_call.1
= control target key start
LH: loop header
LB: loop body
LE: loop exit
PB: predicated region body
PF: predicated region fallthrough
CT: control target
= control target key end

     0   :  { %s5043_s0 = inlined_call_operand.hbm [shape: f32[8,16,16], index: 0, kind: input, shape index: {}]   ;;  %s5044_s1 = inlined_call_operand.hbm [shape: f32[16,384], index: 1, kind: input, shape index: {}]   ;;  %s5045_s2 = inlined_call_operand.hbm [shape: f32[128,384], index: 2, kind: input, shape index: {}]   ;;  %s5046_s3 = inlined_call_operand.vmem [shape: f32[1,384], index: 3, kind: input, shape index: {}]   ;;  %s5047_s4 = inlined_call_operand.vmem [shape: f32[1,128], index: 4, kind: input, shape index: {}]   ;;  %s5048_s5 = inlined_call_operand.hbm [shape: f32[128,768], index: 5, kind: input, shape index: {}]   ;;  %s5049_s6 = inlined_call_operand.vmem [shape: f32[1,384], index: 6, kind: input, shape index: {}]   ;;  %s5050_s7 = inlined_call_operand.vmem [shape: f32[1,128], index: 7, kind: input, shape index: {}]   ;;  %s5051_s8 = inlined_call_operand.hbm [shape: f32[128,128], index: 8, kind: input, shape index: {}]   ;;  %s5052_s9 = inlined_call_operand.vmem [shape: f32[1,128], index: 9, kind: input, shape index: {}]   ;;  %s5053_s10 = inlined_call_operand.hbm [shape: f32[16,128], index: 10, kind: output, shape index: {}]  }
   0x1   :  { %5062 = sst [smem:[#allocation18_spill]] %s5044_s1 }
   0x2   :  { %5063 = sst [smem:[#allocation19_spill]] %s5053_s10 }
   0x3   :  { %15 = vsyncpa [#allocation3], 0 }
   0x4   :  { %17 = vsyncpa [#allocation3 + $0x1], 0 }
   0x5   :  { %18 = vsyncpa [#allocation6], 0 }
   0x6   :  { %19 = vsyncpa [#allocation9], 0 }
   0x7   :  { %20 = vsyncpa [#allocation4], 0 }
   0x8   :  { %22 = vsyncpa [#allocation4 + $0x1], 0  ;;  %s4279_s13 = smov 0   ;;  %s4281_s14 = smov 0  }
   0x9   :  { %s4283_s15 = smov 0   ;;  %s4285_s16 = smov 0  }
   0xa LB: > { %5064 = sst [smem:[#allocation16_spill]] %s4194_s13  ;;  %s4300_s17 = sadd.s32 4294967295, %s4206_s16   ;;  %s4206_s16 = sphi %s4285_s16, %s5091_s16   ;;  %s4202_s15 = sphi %s4283_s15, %s5090_s15   ;;  %s4198_s14 = sphi %s4281_s14, %s5089_s14   ;;  %s4194_s13 = sphi %s4279_s13, %s5088_s13  }
   0xb   : > { %s2643_s18 = sadd.s32 4294967294, %s4206_s16   ;;  %p48_p0 = scmp.ne.s32.totalorder %s4198_s14, %s4194_s13 }
   0xc   : > { %p5054_p1 = scmp.eq.s32.totalorder %s4300_s17, 0  ;;  %p267_p3 = scmp.eq.s32.totalorder %s2643_s18, 1 }
   0xd   : > { %p2644_p5 = scmp.ge.s32.totalorder %s4206_s16, 1  ;;  %p274_p7 = scmp.lt.s32.totalorder %s4206_s16, 3 }
   0xe   : > { %p4309_p4 = por %p5054_p1, %p48_p0  ;;  %p4314_p6 = por %p267_p3, %p48_p0 }
   0xf   : > { %p4319_p8 = pnand %p2644_p5, %p274_p7  ;;  %s4208_s22 = smov [#allocation5]  }
  0x10   : > { %s5065_s19 = scalar_select %p4309_p4, 1, 0 }
  0x11   : > { %s5066_s20 = scalar_select %p4314_p6, 1, 0 }
  0x12   : > { %s5068_s21 = scalar_select %p4319_p8, 1, 0 }
  0x13   : > { %5067 = sst [smem:[#allocation17_spill]] %s5066_s20  ;;  %s286_s23 = sshll.u32 %s4208_s22, 4  ;;  %s4323_s23 = int_to_ptr.vmem [resolvable:$true] %s286_s23 }
  0x14   : > { %p3822_p9 = pneg %p4319_p8  ;;  %s4209_s25 = smov [#allocation8]  }
  0x15   : > { %s318_s26 = sshll.u32 %s4209_s25, 4  ;;  %s5070_s1 = sld [smem:[#allocation18_spill]]  ;;  %s4334_s26 = int_to_ptr.vmem [resolvable:$true] %s318_s26 }
  0x16   : > { %p4330_p11 = pnand %p3822_p9, %p5054_p1 }
  0x18   : > { %p4344_p13 = pneg %p4330_p11 }
  0x1b   : > { %s3990_s29 = scalar_lea.hbm %s5070_s1, 768 }
  0x1c   : > { %p3991_p12 = scmp.ne.s32.totalorder %s5070_s1, %s3990_s29  ;;  %p3997_p5 = scmp.lt.u32.totalorder %s3990_s29, %s5070_s1 }
  0x1e   : > { %p3993_p0 = pnand %p4344_p13, %p3991_p12 }
  0x20   : > { %p3994_p3 = pneg %p3993_p0 }
  0x22   : > { %p3999_p7 = pnand %p3997_p5, %p3994_p3 }
  0x24   : > { %4002 = shalt.err (!%p3999_p7)
}
  0x25   : > { %s4003_s25 = scalar_lea.vmem %s4323_s23, 768  ;;  %p4011_p2 = scmp.lt.s32.totalorder %s4323_s23, %s4323_s23 }
  0x26   : > { %p4004_p9 = scmp.ne.s32.totalorder %s4323_s23, %s4003_s25  ;;  %p4012_p6 = scmp.lt.s32.totalorder %s4003_s25, %s4003_s25 }
  0x28   : > { %p4006_p10 = pnand %p4004_p9, %p4344_p13  ;;  %p4013_p12 = por %p4012_p6, %p4011_p2 }
  0x2a   : > { %p4007_p1 = pneg %p4006_p10 }
  0x2c   : > { %p4014_p0 = pnand %p4013_p12, %p4007_p1 }
  0x2e   : > { %4017 = shalt.err (!%p4014_p0)
}
  0x2f   : > { %s5058_s27 = smov 384   ;;  %s5059_s28 = smov 24  }
  0x30   : > { %3825 = dma.hbm_to_vmem [thread:$0]  (!%p4330_p11), %s5070_s1, 768, %s4323_s23, [#allocation6], %s5058_s27, %s5058_s27, %s5059_s28  }
  0x31   : > { %s4018_s22 = scalar_lea.hbm %s5048_s5, 12288 }
  0x32   : > { %p4019_p1 = scmp.ne.s32.totalorder %s5048_s5, %s4018_s22  ;;  %p4025_p10 = scmp.lt.u32.totalorder %s4018_s22, %s5048_s5 }
  0x34   : > { %p4021_p2 = pnand %p4019_p1, %p4344_p13 }
  0x36   : > { %p4022_p6 = pneg %p4021_p2 }
  0x38   : > { %p4027_p3 = pnand %p4025_p10, %p4022_p6 }
  0x3a   : > { %4030 = shalt.err (!%p4027_p3)
}
  0x3b   : > { %s4031_s23 = scalar_lea.vmem %s4334_s26, 12288  ;;  %p4039_p12 = scmp.lt.s32.totalorder %s4334_s26, %s4334_s26 }
  0x3c   : > { %p4032_p5 = scmp.ne.s32.totalorder %s4334_s26, %s4031_s23  ;;  %p4040_p0 = scmp.lt.s32.totalorder %s4031_s23, %s4031_s23 }
  0x3e   : > { %p4034_p7 = pnand %p4032_p5, %p4344_p13  ;;  %p4041_p1 = por %p4040_p0, %p4039_p12 }
  0x40   : > { %p4035_p9 = pneg %p4034_p7 }
  0x42   : > { %p4042_p2 = pnand %p4041_p1, %p4035_p9 }
  0x44   : > { %4045 = shalt.err (!%p4042_p2)
}
  0x45   : > { %s4212_s20 = smov 768   ;;  %s4213_s10 = smov 48  }
  0x46   : > { %3831 = dma.hbm_to_vmem [thread:$0]  (!%p4330_p11), %s5048_s5, 12288, %s4334_s26, [#allocation9], %s4212_s20, %s4212_s20, %s4213_s10  }
  0x47   : > { %s4214_s30 = smov [#allocation7]   ;;  %s4215_s18 = smov [#allocation10]  }
  0x48   : > { %s299_s11 = sshll.u32 %s4214_s30, 4  ;;  %s337_s22 = sshll.u32 %s4215_s18, 4  ;;  %s300_s11 = int_to_ptr.vmem [resolvable:$true] %s299_s11  ;;  %s4391_s22 = int_to_ptr.vmem [resolvable:$true] %s337_s22 }
  0x49   : > { %s4046_s27 = scalar_lea.hbm %s5045_s2, 6144 }
  0x4a   : > { %p4047_p6 = scmp.ne.s32.totalorder %s5045_s2, %s4046_s27  ;;  %p4053_p5 = scmp.lt.u32.totalorder %s4046_s27, %s5045_s2 }
  0x4c   : > { %p4049_p10 = pnand %p4047_p6, %p4344_p13 }
  0x4e   : > { %p4050_p3 = pneg %p4049_p10 }
  0x50   : > { %p4055_p7 = pnand %p4053_p5, %p4050_p3 }
  0x52   : > { %4058 = shalt.err (!%p4055_p7)
}
  0x53   : > { %s4059_s20 = scalar_lea.vmem %s300_s11, 6144  ;;  %p4067_p1 = scmp.lt.s32.totalorder %s300_s11, %s300_s11 }
  0x54   : > { %p4060_p9 = scmp.ne.s32.totalorder %s300_s11, %s4059_s20  ;;  %p4068_p2 = scmp.lt.s32.totalorder %s4059_s20, %s4059_s20 }
  0x56   : > { %p4062_p12 = pnand %p4060_p9, %p4344_p13  ;;  %p4069_p4 = por %p4068_p2, %p4067_p1 }
  0x58   : > { %p4063_p0 = pneg %p4062_p12 }
  0x5a   : > { %p4070_p8 = pnand %p4069_p4, %p4063_p0 }
  0x5c   : > { %4073 = shalt.err (!%p4070_p8)
}
  0x5d   : > { %s5072_s1 = smov 24   ;;  %s5073_s28 = smov 384  }
  0x5e   : > { %3828 = dma.hbm_to_vmem [thread:$0]  (!%p4330_p11), %s5045_s2, 6144, %s300_s11, [#allocation6], %s5073_s28, %s5073_s28, %s5072_s1  }
  0x5f   : > { %s4074_s18 = scalar_lea.hbm %s5051_s8, 2048 }
  0x60   : > { %p4075_p6 = scmp.ne.s32.totalorder %s5051_s8, %s4074_s18  ;;  %p4081_p10 = scmp.lt.u32.totalorder %s4074_s18, %s5051_s8 }
  0x62   : > { %p4077_p4 = pnand %p4075_p6, %p4344_p13 }
  0x64   : > { %p4078_p8 = pneg %p4077_p4 }
  0x66   : > { %p4083_p3 = pnand %p4081_p10, %p4078_p8 }
  0x68   : > { %4086 = shalt.err (!%p4083_p3)
}
  0x69   : > { %s4087_s11 = scalar_lea.vmem %s4391_s22, 2048  ;;  %p4095_p12 = scmp.lt.s32.totalorder %s4391_s22, %s4391_s22 }
  0x6a   : > { %p4088_p5 = scmp.ne.s32.totalorder %s4391_s22, %s4087_s11  ;;  %p4096_p0 = scmp.lt.s32.totalorder %s4087_s11, %s4087_s11 }
  0x6c   : > { %p4090_p7 = pnand %p4088_p5, %p4344_p13  ;;  %p4097_p1 = por %p4096_p0, %p4095_p12 }
  0x6e   : > { %p4091_p9 = pneg %p4090_p7 }
  0x70   : > { %p4098_p2 = pnand %p4097_p1, %p4091_p9 }
  0x72   : > { %4101 = shalt.err (!%p4098_p2)
}
  0x73   : > { %s4216_s20 = smov 128   ;;  %s4217_s12 = smov 8  }
  0x74   : > { %3834 = dma.hbm_to_vmem [thread:$0]  (!%p4330_p11), %s5051_s8, 2048, %s4391_s22, [#allocation9], %s4216_s20, %s4216_s20, %s4217_s12  }
  0x75   : > { %s4441_s10 = sadd.s32 1, %s4206_s16   ;;  %s35_s29 = sadd.s32 1, %s4202_s15 }
  0x76   : > { %s32_s27 = ssub.s32 %s4206_s16, %s4441_s10  ;;  %p42_p6 = scmp.ne.s32.totalorder %s4202_s15, %s4198_s14 }
  0x77   : > { %p33_p13 = scmp.eq.s32.totalorder %s32_s27, 0  ;;  %p43_p4 = scmp.eq.s32.totalorder %s4206_s16, 0 }
  0x78   : > { %p5074_p10 = scmp.eq.s32.totalorder %s4300_s17, 1  ;;  %p3847_p5 = scmp.lt.s32.totalorder %s4206_s16, 2 }
  0x79   : > { %s4450_s30 = scalar_select %p33_p13, %s4202_s15, %s35_s29  }
  0x7a   : > { %p44_p8 = por %p43_p4, %p42_p6  ;;  %p4454_p3 = por %p5074_p10, %p42_p6 }
  0x7b   : > { %s354_s18 = sand.u32 1, %s4202_s15   ;;  %s2651_s22 = sshll.u32 %s4206_s16, 7 }
  0x7c   : > { %s2650_s25 = sshll.u32 %s354_s18, 6  ;;  %s4464_s26 = scalar_lea.hbm %s5043_s0, %s2651_s22 }
  0x7d   : > { %s358_s11 = scalar_lea.vmem [#allocation2], %s2650_s25  ;;  %p4468_p11 = pnand %p3847_p5, %p44_p8 }
  0x7e   : > { %s364_s1 = sshll.u32 %s358_s11, 4  ;;  %s4472_s27 = scalar_lea.sflag [#allocation3], %s354_s18  ;;  %s4466_s1 = int_to_ptr.vmem [resolvable:$true] %s364_s1 }
  0x7f   : > { %s4102_s29 = scalar_lea.hbm %s4464_s26, 1024  ;;  %p4104_p9 = pneg %p4468_p11 }
  0x80   : > { %p4103_p7 = scmp.ne.s32.totalorder %s4464_s26, %s4102_s29  ;;  %s4107_s23 = scalar_lea.hbm %s5043_s0, 2048 }
  0x81   : > { %p4108_p1 = scmp.lt.u32.totalorder %s4464_s26, %s5043_s0  ;;  %p4109_p2 = scmp.lt.u32.totalorder %s4107_s23, %s4102_s29 }
  0x82   : > { %p4105_p12 = pnand %p4104_p9, %p4103_p7  ;;  %p4111_p6 = scmp.lt.u32.totalorder %s4102_s29, %s4464_s26 }
  0x83   : > { %p4110_p13 = por %p4109_p2, %p4108_p1 }
  0x84   : > { %p4106_p0 = pneg %p4105_p12 }
  0x85   : > { %p4112_p4 = por %p4111_p6, %p4110_p13 }
  0x87   : > { %p4113_p8 = pnand %p4112_p4, %p4106_p0 }
  0x89   : > { %4116 = shalt.err (!%p4113_p8)
}
  0x8a   : > { %s4117_s18 = scalar_lea.vmem %s4466_s1, 1024  ;;  %s4218_s25 = smov [#allocation2]  }
  0x8b   : > { %p4118_p10 = scmp.ne.s32.totalorder %s4466_s1, %s4117_s18  ;;  %s4122_s22 = sshll.u32 %s4218_s25, 4  ;;  %s4123_s22 = int_to_ptr.vmem [resolvable:$false] %s4122_s22 }
  0x8c   : > { %s4124_s13 = scalar_lea.vmem %s4123_s22, 2048  ;;  %p4125_p12 = scmp.lt.s32.totalorder %s4466_s1, %s4123_s22 }
  0x8d   : > { %p4120_p5 = pnand %p4118_p10, %p4104_p9  ;;  %p4126_p1 = scmp.lt.s32.totalorder %s4124_s13, %s4117_s18 }
  0x8f   : > { %p4121_p7 = pneg %p4120_p5  ;;  %p4127_p2 = por %p4126_p1, %p4125_p12 }
  0x91   : > { %p4128_p13 = pnand %p4127_p2, %p4121_p7 }
  0x93   : > { %4131 = shalt.err (!%p4128_p13)
}
  0x94   : > { %s4219_s29 = smov 256   ;;  %p5077_p9 = scmp.ne.s32.totalorder %s5068_s21, 0 }
  0x95   : > { %3838 = dma.hbm_to_vmem [thread:$0]  (!%p4468_p11), %s4464_s26, 1024, %s4466_s1, %s4472_s27, %s4219_s29, %s4216_s20, %s4217_s12  }
  0x96   : > { %376 = sbr.rel (%p5077_p9) target bundleno = 2784 (0xae0), region = 60  ;;  %s4505_s23 = sand.u32 (!%p5077_p9), 1, %s4198_s14  }
  0x97   : > { %s2653_s11 = sshll.u32 (!%p5077_p9), %s4505_s23, 6  ;;  %s379_s18 = scalar_lea.sflag (!%p5077_p9), [#allocation3], %s4505_s23 }
  0x98   : > { %s4509_s25 = scalar_lea.vmem (!%p5077_p9), [#allocation2], %s2653_s11  ;;  %p5078_p0 = scmp.ne.s32.totalorder (!%p5077_p9), %s5065_s19, 0 }
  0x9d   : > { %4177 = dma.done.wait (%p5078_p0), %s379_s18, 1024  }
  0x9e   : > { %4179 = vsyncadd (%p5078_p0), %s379_s18, 4294966272  ;;  %p5079_p11 = scmp.eq.s32.totalorder %s4300_s17, 0 }
  0xa0   : > { %4181 = dma.done.wait (%p5079_p11), [#allocation6], 6912   ;;  %p5080_p6 = pmov %p5079_p11 }
  0xa2   : > { %4183 = vsyncadd (%p5080_p6), [#allocation6], 4294960384  ;;  %p5081_p4 = pmov %p5080_p6 }
  0xa4   : > { %4185 = dma.done.wait (%p5081_p4), [#allocation9], 14336   ;;  %p5082_p8 = pmov %p5081_p4 }
  0xa5   : > { %v4220_v0 = vmov 0.0   ;;  %v436_v1 = vld [vmem:[#allocation5 + $0x8] sm:$0xff]  ;;  %v439_v2 = vld [vmem:[#allocation5 + $0x20] sm:$0xff]  ;;  %v438_v5 = vld [vmem:[#allocation5 + $0x18] sm:$0xff]  ;;  %vm642_vm0 = vcmask 130048   ;;  %v4221_v48 = vmov 0.0|0.0  }
  0xa6   : > { %4187 = vsyncadd (%p5082_p8), [#allocation9], 4294952960  ;;  %731 = vmatprep.mubr.f32.mxu0 %v4220_v0  ;;  %v435_v3 = vld [vmem:[#allocation5] sm:$0xff]  ;;  %v3194_v4 = vpack.c.bf16 %v439_v2, %v436_v1  ;;  %v442_v7 = vld [vmem:[#allocation7 + $0x8] sm:$0xff]  ;;  %vm4222_vm1 = vmmov 0   ;;  %s2658_s29 = sshll.u32 %s4505_s23, 3 }
  0xa7   : > { %v618_v6 = vld [vmem:[%s4509_s25] sm:$0xff]  ;;  %v3196_v8 = vpack.c.bf16 %v438_v5, %v435_v3  ;;  %v445_v9 = vld [vmem:[#allocation7 + $0x20] sm:$0xff]  ;;  %v444_v11 = vld [vmem:[#allocation7 + $0x18] sm:$0xff]  ;;  %s434_s19 = scalar_lea.vmem [#allocation11], %s2658_s29  ;;  %s5083_s26 = sld [smem:[#allocation19_spill]] }
  0xa8   : > { %v441_v10 = vld [vmem:[#allocation7] sm:$0xff]  ;;  %2867 = vmatprep.mubr.msk.f32.mxu1 %vm642_vm0, %v618_v6  ;;  %3195 = vmatprep.subr.bf16.mxu0 %v3194_v4  ;;  %v4526_v12 = vpack.c.bf16 %v445_v9, %v442_v7  ;;  %v448_v13 = vld [vmem:[#allocation7 + $0x38] sm:$0xff]  ;;  %v451_v14 = vld [vmem:[#allocation7 + $0x50] sm:$0xff]  ;;  %s2535_s21 = sshll.u32 %s434_s19, 4  ;;  %s2522_s28 = scalar_lea.sflag [#allocation4], %s4505_s23  ;;  %s5001_s21 = int_to_ptr.vmem [resolvable:$true] %s2535_s21 }
  0xa9   : > { %3197 = vmatpush1.bf16.msra.mxu0 %v3196_v8  ;;  %v4528_v15 = vpack.c.bf16 %v444_v11, %v441_v10  ;;  %v4531_v16 = vpack.c.bf16 %v451_v14, %v448_v13  ;;  %v447_v17 = vld [vmem:[#allocation7 + $0x30] sm:$0xff]  ;;  %v450_v18 = vld [vmem:[#allocation7 + $0x48] sm:$0xff]  ;;  %v457_v20 = vld [vmem:[#allocation7 + $0x80] sm:$0xff]  ;;  %s4132_s27 = scalar_lea.vmem %s5001_s21, 128 }
  0xaa   : > { %3203 = vmatprep.subr.bf16.mxu0 %v4526_v12  ;;  %v454_v19 = vld [vmem:[#allocation7 + $0x68] sm:$0xff]  ;;  %v619_v21 = vld [vmem:[%s4509_s25 + $0x8] sm:$0xff]  ;;  %v4537_v22 = vpack.c.bf16 %v450_v18, %v447_v17  ;;  %v453_v24 = vld [vmem:[#allocation7 + $0x60] sm:$0xff]  ;;  %p4133_p10 = scmp.ne.s32.totalorder %s5001_s21, %s4132_s27 }
  0xab   : > { %v4540_v23 = vpack.c.bf16 %v457_v20, %v454_v19  ;;  %v456_v25 = vld [vmem:[#allocation7 + $0x78] sm:$0xff]  ;;  %v463_v27 = vld [vmem:[#allocation7 + $0xb0] sm:$0xff]  ;;  %v437_v28 = vld [vmem:[#allocation5 + $0x10] sm:$0xff] }
  0xac   : > { %2661 = vmatmul.mubr.msk.f32.vlgmr.msra.gmra.mrb[0].mxu0 %vm642_vm0, %v618_v6  ;;  %v460_v26 = vld [vmem:[#allocation7 + $0x98] sm:$0xff]  ;;  %v620_v30 = vld [vmem:[%s4509_s25 + $0x10] sm:$0xff]  ;;  %v4546_v31 = vpack.c.bf16 %v456_v25, %v453_v24  ;;  %v459_v34 = vld [vmem:[#allocation7 + $0x90] sm:$0xff]  ;;  %p4134_p5 = pnand %p4133_p10, %p4454_p3 }
  0xad   : > { %3205 = vmatpush1.bf16.msra.mxu0 %v4528_v15  ;;  %737 = vmatprep.mubr.f32.mxu0 %v4220_v0  ;;  %v440_v29 = vld [vmem:[#allocation5 + $0x28] sm:$0xff]  ;;  %v4549_v33 = vpack.c.bf16 %v463_v27, %v460_v26  ;;  %v462_v35 = vld [vmem:[#allocation7 + $0xa8] sm:$0xff]  ;;  %v443_v36 = vld [vmem:[#allocation7 + $0x10] sm:$0xff] }
  0xae   : > { %3207 = vmatprep.subr.bf16.mxu0 %v4531_v16  ;;  %v3198_v32 = vpack.c.bf16 %v440_v29, %v437_v28  ;;  %v466_v37 = vld [vmem:[#allocation7 + $0xc8] sm:$0xff]  ;;  %v469_v38 = vld [vmem:[#allocation7 + $0xe0] sm:$0xff]  ;;  %v4557_v42 = vpack.c.bf16 %v462_v35, %v459_v34  ;;  %v452_v44 = vld [vmem:[#allocation7 + $0x58] sm:$0xff]  ;;  %v627_v35 = vlaneseq  ;;  %p4135_p7 = pneg %p4134_p5 }
  0xaf   : > { %v446_v39 = vld [vmem:[#allocation7 + $0x28] sm:$0xff]  ;;  %v449_v43 = vld [vmem:[#allocation7 + $0x40] sm:$0xff]  ;;  %v4560_v45 = vpack.c.bf16 %v469_v38, %v466_v37  ;;  %v468_v47 = vld [vmem:[#allocation7 + $0xd8] sm:$0xff] }
  0xb0   : > { %2662 = vmatmul.mubr.msk.f32.gmra.mrb[2].mxu0 %vm642_vm0, %v619_v21  ;;  %3199 = vmatprep.subr.bf16.mxu1 %v3198_v32  ;;  %v4552_v40 = vpack.c.bf16 %v446_v39, %v443_v36  ;;  %v621_v41 = vld [vmem:[%s4509_s25 + $0x18] sm:$0xff]  ;;  %v465_v46 = vld [vmem:[#allocation7 + $0xc0] sm:$0xff]  ;;  %v472_v49 = vld [vmem:[#allocation7 + $0xf8] sm:$0xff]  ;;  %v4566_v51 = vpack.c.bf16 %v452_v44, %v449_v43  ;;  %v4677_v36 = vshrl.u32 %v627_v35, 7 }
  0xb1   : > { %3209 = vmatpush1.bf16.msra.mxu0 %v4537_v22  ;;  %743 = vmatprep.mubr.f32.mxu0 %v4220_v0  ;;  %v475_v50 = vld [vmem:[#allocation7 + $0x110] sm:$0xff]  ;;  %v4571_v53 = vpack.c.bf16 %v468_v47, %v465_v46  ;;  %v458_v55 = vld [vmem:[#allocation7 + $0x88] sm:$0xff]  ;;  %v481_v60 = vld [vmem:[#allocation7 + $0x140] sm:$0xff] }
  0xb2   : > { %3211 = vmatprep.subr.bf16.mxu0 %v4540_v23  ;;  %3201 = vmatpush3.bf16.msra.mxu1 %v3198_v32  ;;  %v622_v52 = vld [vmem:[%s4509_s25 + $0x20] sm:$0xff]  ;;  %v4574_v56 = vpack.c.bf16 %v475_v50, %v472_v49  ;;  %v474_v58 = vld [vmem:[#allocation7 + $0x108] sm:$0xff]  ;;  %v623_v62 = vld [vmem:[%s4509_s25 + $0x28] sm:$0xff]  ;;  %v637_v37 = vsub.s32 2, %v4677_v36 }
  0xb3   : > { %3234 = vmatprep.subr.bf16.mxu1 %v4221_v48  ;;  %v455_v54 = vld [vmem:[#allocation7 + $0x70] sm:$0xff]  ;;  %v478_v59 = vld [vmem:[#allocation7 + $0x128] sm:$0xff]  ;;  %v461_v1 = vld [vmem:[#allocation7 + $0xa0] sm:$0xff] }
  0xb4   : > { %2663 = vmatmul.mubr.msk.f32.gmra.mrb[4].mxu0 %vm642_vm0, %v620_v30  ;;  %v471_v57 = vld [vmem:[#allocation7 + $0xf0] sm:$0xff]  ;;  %v4580_v61 = vpack.c.bf16 %v458_v55, %v455_v54  ;;  %v464_v2 = vld [vmem:[#allocation7 + $0xb8] sm:$0xff]  ;;  %v4588_v3 = vpack.c.bf16 %v481_v60, %v478_v59  ;;  %v477_v4 = vld [vmem:[#allocation7 + $0x120] sm:$0xff]  ;;  %v633_v55 = vsub.s32 1, %v4677_v36 }
  0xb5   : > { %3213 = vmatpush1.bf16.msra.mxu0 %v4546_v31  ;;  %749 = vmatprep.mubr.f32.mxu0 %v4220_v0  ;;  %v4585_v63 = vpack.c.bf16 %v474_v58, %v471_v57  ;;  %v480_v5 = vld [vmem:[#allocation7 + $0x138] sm:$0xff]  ;;  %v487_v7 = vld [vmem:[#allocation7 + $0x170] sm:$0xff]  ;;  %v4594_v8 = vpack.c.bf16 %v464_v2, %v461_v1  ;;  %v624_v9 = vld [vmem:[%s4509_s25 + $0x30] sm:$0xff] }
  0xb6   : > { %3215 = vmatprep.subr.bf16.mxu0 %v4549_v33  ;;  %2868 = vmatmul.mubr.msk.f32.vlgmr.msra.gmra.mrb[0].mxu1 %vm642_vm0, %v619_v21  ;;  %v484_v6 = vld [vmem:[#allocation7 + $0x158] sm:$0xff]  ;;  %v4599_v10 = vpack.c.bf16 %v480_v5, %v477_v4  ;;  %v467_v11 = vld [vmem:[#allocation7 + $0xd0] sm:$0xff]  ;;  %v470_v13 = vld [vmem:[#allocation7 + $0xe8] sm:$0xff] }
  0xb7   : > { %3236 = vmatpush3.bf16.msra.mxu1 %v4552_v40  ;;  %2870 = vmatprep.mubr.msk.f32.mxu1 %vm642_vm0, %v620_v30  ;;  %v4602_v14 = vpack.c.bf16 %v487_v7, %v484_v6  ;;  %v483_v17 = vld [vmem:[#allocation7 + $0x150] sm:$0xff]  ;;  %v486_v18 = vld [vmem:[#allocation7 + $0x168] sm:$0xff]  ;;  %v4608_v19 = vpack.c.bf16 %v470_v13, %v467_v11  ;;  %v473_v24 = vld [vmem:[#allocation7 + $0x100] sm:$0xff] }
  0xb8   : > { %2664 = vmatmul.mubr.msk.f32.gmra.mrb[6].mxu0 %vm642_vm0, %v621_v41  ;;  %3237 = vmatprep.subr.bf16.mxu1 %v4221_v48  ;;  %v625_v20 = vld [vmem:[%s4509_s25 + $0x38] sm:$0xff]  ;;  %v4613_v21 = vpack.c.bf16 %v486_v18, %v483_v17  ;;  %v476_v25 = vld [vmem:[#allocation7 + $0x118] sm:$0xff]  ;;  %v479_v27 = vld [vmem:[#allocation7 + $0x130] sm:$0xff]  ;;  %s2697_s25 = sshll.u32 %s4300_s17, 7  ;;  %s4223_s17 = smov [#allocation11]  }
  0xb9   : > { %3217 = vmatpush1.bf16.msra.mxu0 %v4557_v42  ;;  %755 = vmatprep.mubr.f32.mxu0 %v4220_v0  ;;  %v4620_v26 = vpack.c.bf16 %v476_v25, %v473_v24  ;;  %v482_v28 = vld [vmem:[#allocation7 + $0x148] sm:$0xff]  ;;  %v485_v30 = vld [vmem:[#allocation7 + $0x160] sm:$0xff]  ;;  %v488_v32 = vld [vmem:[#allocation7 + $0x178] sm:$0xff]  ;;  %s4999_s1 = scalar_lea.hbm %s5083_s26, %s2697_s25  ;;  %s4136_s22 = sshll.u32 %s4223_s17, 4  ;;  %s4137_s22 = int_to_ptr.vmem [resolvable:$false] %s4136_s22 }
  0xba   : > { %3219 = vmatprep.subr.bf16.mxu0 %v4560_v45  ;;  %2871 = vmatmul.mubr.msk.f32.gmra.mrb[2].mxu1 %vm642_vm0, %v621_v41  ;;  %v4630_v29 = vpack.c.bf16 %v482_v28, %v479_v27  ;;  %v4639_v34 = vpack.c.bf16 %v488_v32, %v485_v30  ;;  %v489_v38 = vld [vmem:[%s5046_s3] sm:$0x7]  ;;  %s4138_s13 = scalar_lea.vmem %s4137_s22, 256  ;;  %p4139_p12 = scmp.lt.s32.totalorder %s5001_s21, %s4137_s22 }
  0xbb   : > { %3239 = vmatpush3.bf16.msra.mxu1 %v4566_v51  ;;  %2873 = vmatprep.mubr.msk.f32.mxu1 %vm642_vm0, %v622_v52  ;;  %v638_v39 = vrot.slane %v489_v38, %v637_v37  ;;  %v4703_v2 = vrot.slane %v489_v38, %v633_v55  ;;  %v4714_v28 = vld [vmem:[%s5047_s4] ss:$0 sm:$0xff]  ;;  %p4140_p1 = scmp.lt.s32.totalorder %s4138_s13, %s4132_s27 }
  0xbc   : > { %2665 = vmatmul.mubr.msk.f32.gmra.mrb[8].mxu0 %vm642_vm0, %v622_v52  ;;  %3240 = vmatprep.subr.bf16.mxu1 %v4221_v48  ;;  %v629_v52 = vsub.s32 0, %v4677_v36 }
  0xbd   : > { %3221 = vmatpush1.bf16.msra.mxu0 %v4571_v53  ;;  %761 = vmatprep.mubr.f32.mxu0 %v4220_v0  ;;  %p4141_p2 = por %p4140_p1, %p4139_p12 }
  0xbe   : > { %3223 = vmatprep.subr.bf16.mxu0 %v4574_v56  ;;  %2874 = vmatmul.mubr.msk.f32.gmra.mrb[4].mxu1 %vm642_vm0, %v623_v62  ;;  %v4697_v59 = vrot.slane %v489_v38, %v629_v52 }
  0xbf   : > { %3242 = vmatpush3.bf16.msra.mxu1 %v4580_v61  ;;  %2876 = vmatprep.mubr.msk.f32.mxu1 %vm642_vm0, %v624_v9  ;;  %p4142_p13 = pnand %p4141_p2, %p4135_p7 }
  0xc0   : > { %2666 = vmatmul.mubr.msk.f32.gmra.mrb[10].mxu0 %vm642_vm0, %v623_v62  ;;  %3243 = vmatprep.subr.bf16.mxu1 %v4221_v48 }
  0xc1   : > { %3225 = vmatpush1.bf16.msra.mxu0 %v4585_v63  ;;  %767 = vmatprep.mubr.f32.mxu0 %v4220_v0 }
  0xc2   : > { %3227 = vmatprep.subr.bf16.mxu0 %v4588_v3  ;;  %2877 = vmatmul.mubr.msk.f32.gmra.mrb[6].mxu1 %vm642_vm0, %v625_v20 }
  0xc3   : > { %3245 = vmatpush3.bf16.msra.mxu1 %v4594_v8  ;;  %2911 = vmatprep.mubr.msk.f32.mxu1 %vm4222_vm1, %v4220_v0 }
  0xc4   : > { %2667 = vmatmul.mubr.msk.f32.gmra.mrb[12].mxu0 %vm642_vm0, %v624_v9  ;;  %3246 = vmatprep.subr.bf16.mxu1 %v4221_v48 }
  0xc5   : > { %3229 = vmatpush1.bf16.msra.mxu0 %v4599_v10  ;;  %773 = vmatprep.mubr.f32.mxu0 %v4220_v0 }
  0xc6   : > { %3231 = vmatprep.subr.bf16.mxu0 %v4602_v14 }
  0xc7   : > { %3248 = vmatpush3.bf16.msra.mxu1 %v4608_v19 }
  0xc8   : > { %2668 = vmatmul.mubr.msk.f32.gmra.mrb[14].mxu0 %vm642_vm0, %v625_v20  ;;  %3249 = vmatprep.subr.bf16.mxu1 %v4221_v48 }
  0xc9   : > { %3233 = vmatpush1.bf16.msra.mxu0 %v4613_v21  ;;  %949 = vmatprep.mubr.f32.mxu0 %v4220_v0 }
  0xca   : > { %3259 = vmatprep.subr.bf16.mxu0 %v4526_v12 }
  0xcb   : > { %3251 = vmatpush3.bf16.msra.mxu1 %v4620_v26 }
  0xcc   : > { %950 = vmatmul.mubr.f32.vlgmr.msra.gmra.mrb[0].mxu0 %v4220_v0  ;;  %3252 = vmatprep.subr.bf16.mxu1 %v4221_v48 }
  0xcd   : > { %3261 = vmatpush1.bf16.msra.mxu0 %v4528_v15  ;;  %1112 = vmatprep.mubr.f32.mxu0 %v4220_v0 }
  0xce   : > { %3263 = vmatprep.subr.bf16.mxu0 %v4531_v16 }
  0xcf   : > { %3254 = vmatpush3.bf16.msra.mxu1 %v4630_v29 }
  0xd0   : > { %3255 = vmatprep.subr.bf16.mxu1 %v4221_v48 }
  0xd1   : > { %3265 = vmatpush1.bf16.msra.mxu0 %v4537_v22 }
  0xd2   : > { %3267 = vmatprep.subr.bf16.mxu0 %v4540_v23 }
  0xd3   : > { %3257 = vmatpush3.bf16.msra.mxu1 %v4639_v34 }
  0xd4   : > { %3290 = vmatprep.subr.bf16.mxu1 %v4221_v48 }
  0xd5   : > { %3269 = vmatpush1.bf16.msra.mxu0 %v4546_v31 }
  0xd6   : > { %2912 = vmatmul.mubr.f32.vlgmr.msra.gmra.mrb[8].mxu1 %v4220_v0  ;;  %3271 = vmatprep.subr.bf16.mxu0 %v4549_v33 }
  0xd7   : > { %3292 = vmatpush3.bf16.msra.mxu1 %v4552_v40  ;;  %2946 = vmatprep.mubr.msk.f32.mxu1 %vm4222_vm1, %v4220_v0 }
  0xd8   : > { %3293 = vmatprep.subr.bf16.mxu1 %v4221_v48 }
  0xd9   : > { %3273 = vmatpush1.bf16.msra.mxu0 %v4557_v42 }
  0xda   : > { %3275 = vmatprep.subr.bf16.mxu0 %v4560_v45 }
  0xdb   : > { %3295 = vmatpush3.bf16.msra.mxu1 %v4566_v51 }
  0xdc   : > { %3296 = vmatprep.subr.bf16.mxu1 %v4221_v48 }
  0xdd   : > { %3277 = vmatpush1.bf16.msra.mxu0 %v4571_v53 }
  0xde   : > { %3279 = vmatprep.subr.bf16.mxu0 %v4574_v56 }
  0xdf   : > { %3298 = vmatpush3.bf16.msra.mxu1 %v4580_v61 }
  0xe0   : > { %3299 = vmatprep.subr.bf16.mxu1 %v4221_v48 }
  0xe1   : > { %3281 = vmatpush1.bf16.msra.mxu0 %v4585_v63 }
  0xe2   : > { %3283 = vmatprep.subr.bf16.mxu0 %v4588_v3 }
  0xe3   : > { %3301 = vmatpush3.bf16.msra.mxu1 %v4594_v8 }
  0xe4   : > { %3302 = vmatprep.subr.bf16.mxu1 %v4221_v48 }
  0xe5   : > { %3285 = vmatpush1.bf16.msra.mxu0 %v4599_v10 }
  0xe6   : > { %3287 = vmatprep.subr.bf16.mxu0 %v4602_v14 }
  0xe7   : > { %3304 = vmatpush3.bf16.msra.mxu1 %v4608_v19 }
  0xe8   : > { %3305 = vmatprep.subr.bf16.mxu1 %v4221_v48 }
  0xe9   : > { %3289 = vmatpush1.bf16.msra.mxu0 %v4613_v21 }
  0xea   : > { %3315 = vmatprep.subr.bf16.mxu0 %v4526_v12 }
  0xeb   : > { %3307 = vmatpush3.bf16.msra.mxu1 %v4620_v26 }
  0xec   : > { %3308 = vmatprep.subr.bf16.mxu1 %v4221_v48 }
  0xef   : > { %3310 = vmatpush3.bf16.msra.mxu1 %v4630_v29 }
  0xf0   : > { %3311 = vmatprep.subr.bf16.mxu1 %v4221_v48 }
  0xf3   : > { %3313 = vmatpush3.bf16.msra.mxu1 %v4639_v34 }
  0xf4   : > { %3346 = vmatprep.subr.bf16.mxu1 %v4221_v48 }
 0x189   : > { %v2869_v41 = vpop.f32.mrb[0].mxu1 }
 0x18a   : > { %v4685_v43 = vadd.f32 %v2869_v41, %v638_v39  ;;  %v846_v44 = vpop.f32.mrb[1].mxu1 }
 0x18b   : > { %v847_v38 = vadd.f32 %v846_v44, %v638_v39 }
 0x18d   : > { %v2872_v46 = vpop.f32.mrb[2].mxu1 }
 0x18e   : > { %v4687_v47 = vadd.f32 %v2872_v46, %v638_v39  ;;  %v856_v49 = vpop.f32.mrb[3].mxu1 }
 0x18f   : > { %v4689_v50 = vadd.f32 %v856_v49, %v638_v39 }
 0x191   : > { %v2875_v54 = vpop.f32.mrb[4].mxu1 }
 0x192   : > { %v4693_v57 = vadd.f32 %v2875_v54, %v638_v39  ;;  %v866_v58 = vpop.f32.mrb[5].mxu1 }
 0x193   : > { %v4699_v60 = vadd.f32 %v866_v58, %v638_v39 }
 0x195   : > { %v2878_v62 = vpop.f32.mrb[6].mxu1 }
 0x196   : > { %v4705_v4 = vadd.f32 %v2878_v62, %v638_v39  ;;  %v876_v5 = vpop.f32.mrb[7].mxu1 }
 0x197   : > { %v4708_v9 = vadd.f32 %v876_v5, %v638_v39 }
 0x19f   : > { %v951_v1 = vpop.f32.mrb[0].mxu0 }
 0x1a0   : > { %v3770_v6 = vadd.f32 %v951_v1, %v4697_v59  ;;  %v953_v7 = vpop.f32.mrb[1].mxu0 }
 0x1a1   : > { %v3771_v13 = vadd.f32 %v953_v7, %v4703_v2 }
 0x1a2   : > { %v2677_v11 = vmul.f32 -1.442695, %v3770_v6 }
 0x1a3   : > { %v2678_v17 = vmul.f32 -1.442695, %v3771_v13 }
 0x1a4   : > { %3899 = vpow2.f32 %v2677_v11 }
 0x1a5   : > { %3901 = vpow2.f32 %v2678_v17 }
 0x1a9   : > { %v1022_v18 = vpop.f32.mrb[8].mxu1 }
 0x1aa   : > { %v2913_v20 = vpop.f32.mrb[9].mxu1  ;;  %v1040_v32 = vadd.f32 %v4714_v28, %v1022_v18 }
 0x1ae   : > { %v3900_v24 = vpop.eup %3899 }
 0x1af   : > { %v1034_v25 = vadd.f32 1.0, %v3900_v24  ;;  %v3902_v27 = vpop.eup %3901 }
 0x1b0   : > { %v1035_v30 = vadd.f32 1.0, %v3902_v27 }
 0x1b1   : > { %3903 = vrcp.f32 %v1034_v25 }
 0x1b2   : > { %3905 = vrcp.f32 %v1035_v30 }
 0x1bb   : > { %v3904_v35 = vpop.eup %3903 }
 0x1bc   : > { %v1041_v41 = vmul.f32 %v3904_v35, %v1040_v32  ;;  %v3906_v49 = vpop.eup %3905 }
 0x1bd   : > { %v1044_v54 = vsub.f32 1.0, %v3906_v49  ;;  %v1046_v1 = vmul.f32 0.0, %v3906_v49 }
 0x1be   : > { %v1042_v46 = vadd.f32 %v1041_v41, %v847_v38 }
 0x1c0   : > { %3907 = vtanh.f32 %v1042_v46 }
 0x1ca   : > { %v3908_v58 = vpop.eup %3907 }
 0x1cb   : > { %v1045_v62 = vmul.f32 %v3908_v58, %v1044_v54 }
 0x1cd   : > { %v1047_v5 = vadd.f32 %v1046_v1, %v1045_v62 }
 0x1cf   : > { %1113 = vmatmul.mubr.f32.vlgmr.msra.gmra.mrb[2].mxu0 %v1047_v5  ;;  %2947 = vmatmul.mubr.f32.vlgmr.msra.gmra.mrb[10].mxu1 %v1047_v5 }
 0x1d0   : > { %3317 = vmatpush1.bf16.msra.mxu0 %v4528_v15  ;;  %3348 = vmatpush3.bf16.msra.mxu1 %v4552_v40 }
 0x1d1   : > { %3319 = vmatprep.subr.bf16.mxu0 %v4531_v16  ;;  %3349 = vmatprep.subr.bf16.mxu1 %v4221_v48 }
 0x1d2   : > { %1275 = vmatprep.mubr.f32.mxu0 %v4220_v0  ;;  %2981 = vmatprep.mubr.msk.f32.mxu1 %vm4222_vm1, %v4220_v0 }
 0x1d4   : > { %3321 = vmatpush1.bf16.msra.mxu0 %v4537_v22  ;;  %3351 = vmatpush3.bf16.msra.mxu1 %v4566_v51 }
 0x1d5   : > { %3323 = vmatprep.subr.bf16.mxu0 %v4540_v23  ;;  %3352 = vmatprep.subr.bf16.mxu1 %v4221_v48 }
 0x1d8   : > { %3325 = vmatpush1.bf16.msra.mxu0 %v4546_v31  ;;  %3354 = vmatpush3.bf16.msra.mxu1 %v4580_v61 }
 0x1d9   : > { %3327 = vmatprep.subr.bf16.mxu0 %v4549_v33  ;;  %3355 = vmatprep.subr.bf16.mxu1 %v4221_v48 }
 0x1dc   : > { %3329 = vmatpush1.bf16.msra.mxu0 %v4557_v42  ;;  %3357 = vmatpush3.bf16.msra.mxu1 %v4594_v8 }
 0x1dd   : > { %3331 = vmatprep.subr.bf16.mxu0 %v4560_v45  ;;  %3358 = vmatprep.subr.bf16.mxu1 %v4221_v48 }
 0x1e0   : > { %3333 = vmatpush1.bf16.msra.mxu0 %v4571_v53  ;;  %3360 = vmatpush3.bf16.msra.mxu1 %v4608_v19 }
 0x1e1   : > { %3335 = vmatprep.subr.bf16.mxu0 %v4574_v56  ;;  %3361 = vmatprep.subr.bf16.mxu1 %v4221_v48 }
 0x1e4   : > { %3337 = vmatpush1.bf16.msra.mxu0 %v4585_v63  ;;  %3363 = vmatpush3.bf16.msra.mxu1 %v4620_v26 }
 0x1e5   : > { %3339 = vmatprep.subr.bf16.mxu0 %v4588_v3  ;;  %3364 = vmatprep.subr.bf16.mxu1 %v4221_v48 }
 0x1e8   : > { %3341 = vmatpush1.bf16.msra.mxu0 %v4599_v10  ;;  %3366 = vmatpush3.bf16.msra.mxu1 %v4630_v29 }
 0x1e9   : > { %3343 = vmatprep.subr.bf16.mxu0 %v4602_v14  ;;  %3367 = vmatprep.subr.bf16.mxu1 %v4221_v48 }
 0x1ec   : > { %3345 = vmatpush1.bf16.msra.mxu0 %v4613_v21  ;;  %3369 = vmatpush3.bf16.msra.mxu1 %v4639_v34 }
 0x1ed   : > { %3371 = vmatprep.subr.bf16.mxu0 %v4526_v12  ;;  %3402 = vmatprep.subr.bf16.mxu1 %v4221_v48 }
 0x2a2   : > { %v1114_v39 = vpop.f32.mrb[2].mxu0  ;;  %v1185_v44 = vpop.f32.mrb[10].mxu1 }
 0x2a3   : > { %v3772_v6 = vadd.f32 %v1114_v39, %v4697_v59  ;;  %v1116_v7 = vpop.f32.mrb[3].mxu0  ;;  %v2948_v11 = vpop.f32.mrb[11].mxu1  ;;  %v1203_v30 = vadd.f32 %v4714_v28, %v1185_v44 }
 0x2a4   : > { %v3773_v17 = vadd.f32 %v1116_v7, %v4703_v2 }
 0x2a5   : > { %v2679_v13 = vmul.f32 -1.442695, %v3772_v6 }
 0x2a6   : > { %v2680_v18 = vmul.f32 -1.442695, %v3773_v17 }
 0x2a7   : > { %3909 = vpow2.f32 %v2679_v13 }
 0x2a8   : > { %3911 = vpow2.f32 %v2680_v18 }
 0x2b1   : > { %v3910_v20 = vpop.eup %3909 }
 0x2b2   : > { %v1197_v24 = vadd.f32 1.0, %v3910_v20  ;;  %v3912_v25 = vpop.eup %3911 }
 0x2b3   : > { %v1198_v27 = vadd.f32 1.0, %v3912_v25 }
 0x2b4   : > { %3913 = vrcp.f32 %v1197_v24 }
 0x2b5   : > { %3915 = vrcp.f32 %v1198_v27 }
 0x2be   : > { %v3914_v32 = vpop.eup %3913 }
 0x2bf   : > { %v1204_v35 = vmul.f32 %v3914_v32, %v1203_v30  ;;  %v3916_v41 = vpop.eup %3915 }
 0x2c0   : > { %v1207_v46 = vsub.f32 1.0, %v3916_v41  ;;  %v1209_v58 = vmul.f32 %v3916_v41, %v1047_v5 }
 0x2c1   : > { %v1205_v38 = vadd.f32 %v1204_v35, %v4685_v43 }
 0x2c3   : > { %3917 = vtanh.f32 %v1205_v38 }
 0x2cd   : > { %v3918_v49 = vpop.eup %3917 }
 0x2ce   : > { %v1208_v54 = vmul.f32 %v3918_v49, %v1207_v46 }
 0x2d0   : > { %v1210_v62 = vadd.f32 %v1209_v58, %v1208_v54 }
 0x2d2   : > { %1276 = vmatmul.mubr.f32.vlgmr.msra.gmra.mrb[4].mxu0 %v1210_v62  ;;  %2982 = vmatmul.mubr.f32.vlgmr.msra.gmra.mrb[12].mxu1 %v1210_v62 }
 0x2d3   : > { %3373 = vmatpush1.bf16.msra.mxu0 %v4528_v15  ;;  %3404 = vmatpush3.bf16.msra.mxu1 %v4552_v40 }
 0x2d4   : > { %3375 = vmatprep.subr.bf16.mxu0 %v4531_v16  ;;  %3405 = vmatprep.subr.bf16.mxu1 %v4221_v48 }
 0x2d5   : > { %1438 = vmatprep.mubr.f32.mxu0 %v4220_v0  ;;  %3016 = vmatprep.mubr.msk.f32.mxu1 %vm4222_vm1, %v4220_v0 }
 0x2d7   : > { %3377 = vmatpush1.bf16.msra.mxu0 %v4537_v22  ;;  %3407 = vmatpush3.bf16.msra.mxu1 %v4566_v51 }
 0x2d8   : > { %3379 = vmatprep.subr.bf16.mxu0 %v4540_v23  ;;  %3408 = vmatprep.subr.bf16.mxu1 %v4221_v48 }
 0x2db   : > { %3381 = vmatpush1.bf16.msra.mxu0 %v4546_v31  ;;  %3410 = vmatpush3.bf16.msra.mxu1 %v4580_v61 }
 0x2dc   : > { %3383 = vmatprep.subr.bf16.mxu0 %v4549_v33  ;;  %3411 = vmatprep.subr.bf16.mxu1 %v4221_v48 }
 0x2df   : > { %3385 = vmatpush1.bf16.msra.mxu0 %v4557_v42  ;;  %3413 = vmatpush3.bf16.msra.mxu1 %v4594_v8 }
 0x2e0   : > { %3387 = vmatprep.subr.bf16.mxu0 %v4560_v45  ;;  %3414 = vmatprep.subr.bf16.mxu1 %v4221_v48 }
 0x2e3   : > { %3389 = vmatpush1.bf16.msra.mxu0 %v4571_v53  ;;  %3416 = vmatpush3.bf16.msra.mxu1 %v4608_v19 }
 0x2e4   : > { %3391 = vmatprep.subr.bf16.mxu0 %v4574_v56  ;;  %3417 = vmatprep.subr.bf16.mxu1 %v4221_v48 }
 0x2e7   : > { %3393 = vmatpush1.bf16.msra.mxu0 %v4585_v63  ;;  %3419 = vmatpush3.bf16.msra.mxu1 %v4620_v26 }
 0x2e8   : > { %3395 = vmatprep.subr.bf16.mxu0 %v4588_v3  ;;  %3420 = vmatprep.subr.bf16.mxu1 %v4221_v48 }
 0x2eb   : > { %3397 = vmatpush1.bf16.msra.mxu0 %v4599_v10  ;;  %3422 = vmatpush3.bf16.msra.mxu1 %v4630_v29 }
 0x2ec   : > { %3399 = vmatprep.subr.bf16.mxu0 %v4602_v14  ;;  %3423 = vmatprep.subr.bf16.mxu1 %v4221_v48 }
 0x2ef   : > { %3401 = vmatpush1.bf16.msra.mxu0 %v4613_v21  ;;  %3425 = vmatpush3.bf16.msra.mxu1 %v4639_v34 }
 0x2f0   : > { %3427 = vmatprep.subr.bf16.mxu0 %v4526_v12  ;;  %3458 = vmatprep.subr.bf16.mxu1 %v4221_v48 }
 0x3a5   : > { %v1277_v43 = vpop.f32.mrb[4].mxu0  ;;  %v1348_v1 = vpop.f32.mrb[12].mxu1 }
 0x3a6   : > { %v3774_v5 = vadd.f32 %v1277_v43, %v4697_v59  ;;  %v1279_v39 = vpop.f32.mrb[5].mxu0  ;;  %v2983_v44 = vpop.f32.mrb[13].mxu1  ;;  %v1366_v24 = vadd.f32 %v4714_v28, %v1348_v1 }
 0x3a7   : > { %v3775_v7 = vadd.f32 %v1279_v39, %v4703_v2 }
 0x3a8   : > { %v2681_v6 = vmul.f32 -1.442695, %v3774_v5 }
 0x3a9   : > { %v2682_v11 = vmul.f32 -1.442695, %v3775_v7 }
 0x3aa   : > { %3919 = vpow2.f32 %v2681_v6 }
 0x3ab   : > { %3921 = vpow2.f32 %v2682_v11 }
 0x3b4   : > { %v3920_v13 = vpop.eup %3919 }
 0x3b5   : > { %v1360_v17 = vadd.f32 1.0, %v3920_v13  ;;  %v3922_v18 = vpop.eup %3921 }
 0x3b6   : > { %v1361_v20 = vadd.f32 1.0, %v3922_v18 }
 0x3b7   : > { %3923 = vrcp.f32 %v1360_v17 }
 0x3b8   : > { %3925 = vrcp.f32 %v1361_v20 }
 0x3c1   : > { %v3924_v25 = vpop.eup %3923 }
 0x3c2   : > { %v1367_v27 = vmul.f32 %v3924_v25, %v1366_v24  ;;  %v3926_v32 = vpop.eup %3925 }
 0x3c3   : > { %v1370_v35 = vsub.f32 1.0, %v3926_v32  ;;  %v1372_v46 = vmul.f32 %v3926_v32, %v1210_v62 }
 0x3c4   : > { %v1368_v30 = vadd.f32 %v1367_v27, %v4689_v50 }
 0x3c6   : > { %3927 = vtanh.f32 %v1368_v30 }
 0x3d0   : > { %v3928_v38 = vpop.eup %3927 }
 0x3d1   : > { %v1371_v41 = vmul.f32 %v3928_v38, %v1370_v35 }
 0x3d3   : > { %v1373_v49 = vadd.f32 %v1372_v46, %v1371_v41 }
 0x3d5   : > { %1439 = vmatmul.mubr.f32.vlgmr.msra.gmra.mrb[6].mxu0 %v1373_v49  ;;  %3017 = vmatmul.mubr.f32.vlgmr.msra.gmra.mrb[14].mxu1 %v1373_v49 }
 0x3d6   : > { %3429 = vmatpush1.bf16.msra.mxu0 %v4528_v15  ;;  %3460 = vmatpush3.bf16.msra.mxu1 %v4552_v40 }
 0x3d7   : > { %3431 = vmatprep.subr.bf16.mxu0 %v4531_v16  ;;  %3461 = vmatprep.subr.bf16.mxu1 %v4221_v48 }
 0x3d8   : > { %1601 = vmatprep.mubr.f32.mxu0 %v4220_v0  ;;  %3051 = vmatprep.mubr.msk.f32.mxu1 %vm4222_vm1, %v4220_v0 }
 0x3da   : > { %3433 = vmatpush1.bf16.msra.mxu0 %v4537_v22  ;;  %3463 = vmatpush3.bf16.msra.mxu1 %v4566_v51 }
 0x3db   : > { %3435 = vmatprep.subr.bf16.mxu0 %v4540_v23  ;;  %3464 = vmatprep.subr.bf16.mxu1 %v4221_v48 }
 0x3de   : > { %3437 = vmatpush1.bf16.msra.mxu0 %v4546_v31  ;;  %3466 = vmatpush3.bf16.msra.mxu1 %v4580_v61 }
 0x3df   : > { %3439 = vmatprep.subr.bf16.mxu0 %v4549_v33  ;;  %3467 = vmatprep.subr.bf16.mxu1 %v4221_v48 }
 0x3e2   : > { %3441 = vmatpush1.bf16.msra.mxu0 %v4557_v42  ;;  %3469 = vmatpush3.bf16.msra.mxu1 %v4594_v8 }
 0x3e3   : > { %3443 = vmatprep.subr.bf16.mxu0 %v4560_v45  ;;  %3470 = vmatprep.subr.bf16.mxu1 %v4221_v48 }
 0x3e6   : > { %3445 = vmatpush1.bf16.msra.mxu0 %v4571_v53  ;;  %3472 = vmatpush3.bf16.msra.mxu1 %v4608_v19 }
 0x3e7   : > { %3447 = vmatprep.subr.bf16.mxu0 %v4574_v56  ;;  %3473 = vmatprep.subr.bf16.mxu1 %v4221_v48 }
 0x3ea   : > { %3449 = vmatpush1.bf16.msra.mxu0 %v4585_v63  ;;  %3475 = vmatpush3.bf16.msra.mxu1 %v4620_v26 }
 0x3eb   : > { %3451 = vmatprep.subr.bf16.mxu0 %v4588_v3  ;;  %3476 = vmatprep.subr.bf16.mxu1 %v4221_v48 }
 0x3ee   : > { %3453 = vmatpush1.bf16.msra.mxu0 %v4599_v10  ;;  %3478 = vmatpush3.bf16.msra.mxu1 %v4630_v29 }
 0x3ef   : > { %3455 = vmatprep.subr.bf16.mxu0 %v4602_v14  ;;  %3479 = vmatprep.subr.bf16.mxu1 %v4221_v48 }
 0x3f2   : > { %3457 = vmatpush1.bf16.msra.mxu0 %v4613_v21  ;;  %3481 = vmatpush3.bf16.msra.mxu1 %v4639_v34 }
 0x3f3   : > { %3483 = vmatprep.subr.bf16.mxu0 %v4526_v12  ;;  %3514 = vmatprep.subr.bf16.mxu1 %v4221_v48 }
 0x4a8   : > { %v1440_v50 = vpop.f32.mrb[6].mxu0  ;;  %v1511_v54 = vpop.f32.mrb[14].mxu1 }
 0x4a9   : > { %v3776_v58 = vadd.f32 %v1440_v50, %v4697_v59  ;;  %v1442_v62 = vpop.f32.mrb[7].mxu0  ;;  %v3018_v43 = vpop.f32.mrb[15].mxu1  ;;  %v1529_v13 = vadd.f32 %v4714_v28, %v1511_v54 }
 0x4aa   : > { %v3777_v5 = vadd.f32 %v1442_v62, %v4703_v2 }
 0x4ab   : > { %v2683_v1 = vmul.f32 -1.442695, %v3776_v58 }
 0x4ac   : > { %v2684_v39 = vmul.f32 -1.442695, %v3777_v5 }
 0x4ad   : > { %3929 = vpow2.f32 %v2683_v1 }
 0x4ae   : > { %3931 = vpow2.f32 %v2684_v39 }
 0x4b7   : > { %v3930_v44 = vpop.eup %3929 }
 0x4b8   : > { %v1523_v6 = vadd.f32 1.0, %v3930_v44  ;;  %v3932_v7 = vpop.eup %3931 }
 0x4b9   : > { %v1524_v11 = vadd.f32 1.0, %v3932_v7 }
 0x4ba   : > { %3933 = vrcp.f32 %v1523_v6 }
 0x4bb   : > { %3935 = vrcp.f32 %v1524_v11 }
 0x4c4   : > { %v3934_v17 = vpop.eup %3933 }
 0x4c5   : > { %v1530_v18 = vmul.f32 %v3934_v17, %v1529_v13  ;;  %v3936_v24 = vpop.eup %3935 }
 0x4c6   : > { %v1533_v25 = vsub.f32 1.0, %v3936_v24  ;;  %v1535_v32 = vmul.f32 %v3936_v24, %v1373_v49 }
 0x4c7   : > { %v1531_v20 = vadd.f32 %v1530_v18, %v4687_v47 }
 0x4c9   : > { %3937 = vtanh.f32 %v1531_v20 }
 0x4d3   : > { %v3938_v27 = vpop.eup %3937 }
 0x4d4   : > { %v1534_v30 = vmul.f32 %v3938_v27, %v1533_v25 }
 0x4d6   : > { %v1536_v35 = vadd.f32 %v1535_v32, %v1534_v30 }
 0x4d8   : > { %1602 = vmatmul.mubr.f32.vlgmr.msra.gmra.mrb[8].mxu0 %v1536_v35  ;;  %3052 = vmatmul.mubr.f32.vlgmr.msra.gmra.mrb[16].mxu1 %v1536_v35 }
 0x4d9   : > { %3485 = vmatpush1.bf16.msra.mxu0 %v4528_v15  ;;  %3516 = vmatpush3.bf16.msra.mxu1 %v4552_v40 }
 0x4da   : > { %3487 = vmatprep.subr.bf16.mxu0 %v4531_v16  ;;  %3517 = vmatprep.subr.bf16.mxu1 %v4221_v48 }
 0x4db   : > { %1764 = vmatprep.mubr.f32.mxu0 %v4220_v0  ;;  %3086 = vmatprep.mubr.msk.f32.mxu1 %vm4222_vm1, %v4220_v0 }
 0x4dd   : > { %3489 = vmatpush1.bf16.msra.mxu0 %v4537_v22  ;;  %3519 = vmatpush3.bf16.msra.mxu1 %v4566_v51 }
 0x4de   : > { %3491 = vmatprep.subr.bf16.mxu0 %v4540_v23  ;;  %3520 = vmatprep.subr.bf16.mxu1 %v4221_v48 }
 0x4e1   : > { %3493 = vmatpush1.bf16.msra.mxu0 %v4546_v31  ;;  %3522 = vmatpush3.bf16.msra.mxu1 %v4580_v61 }
 0x4e2   : > { %3495 = vmatprep.subr.bf16.mxu0 %v4549_v33  ;;  %3523 = vmatprep.subr.bf16.mxu1 %v4221_v48 }
 0x4e5   : > { %3497 = vmatpush1.bf16.msra.mxu0 %v4557_v42  ;;  %3525 = vmatpush3.bf16.msra.mxu1 %v4594_v8 }
 0x4e6   : > { %3499 = vmatprep.subr.bf16.mxu0 %v4560_v45  ;;  %3526 = vmatprep.subr.bf16.mxu1 %v4221_v48 }
 0x4e9   : > { %3501 = vmatpush1.bf16.msra.mxu0 %v4571_v53  ;;  %3528 = vmatpush3.bf16.msra.mxu1 %v4608_v19 }
 0x4ea   : > { %3503 = vmatprep.subr.bf16.mxu0 %v4574_v56  ;;  %3529 = vmatprep.subr.bf16.mxu1 %v4221_v48 }
 0x4ed   : > { %3505 = vmatpush1.bf16.msra.mxu0 %v4585_v63  ;;  %3531 = vmatpush3.bf16.msra.mxu1 %v4620_v26 }
 0x4ee   : > { %3507 = vmatprep.subr.bf16.mxu0 %v4588_v3  ;;  %3532 = vmatprep.subr.bf16.mxu1 %v4221_v48 }
 0x4f1   : > { %3509 = vmatpush1.bf16.msra.mxu0 %v4599_v10  ;;  %3534 = vmatpush3.bf16.msra.mxu1 %v4630_v29 }
 0x4f2   : > { %3511 = vmatprep.subr.bf16.mxu0 %v4602_v14  ;;  %3535 = vmatprep.subr.bf16.mxu1 %v4221_v48 }
 0x4f5   : > { %3513 = vmatpush1.bf16.msra.mxu0 %v4613_v21  ;;  %3537 = vmatpush3.bf16.msra.mxu1 %v4639_v34 }
 0x4f6   : > { %3539 = vmatprep.subr.bf16.mxu0 %v4526_v12  ;;  %3570 = vmatprep.subr.bf16.mxu1 %v4221_v48 }
 0x5ab   : > { %v1603_v47 = vpop.f32.mrb[8].mxu0  ;;  %v1674_v38 = vpop.f32.mrb[16].mxu1 }
 0x5ac   : > { %v3778_v41 = vadd.f32 %v1603_v47, %v4697_v59  ;;  %v1605_v46 = vpop.f32.mrb[9].mxu0  ;;  %v3053_v49 = vpop.f32.mrb[17].mxu1  ;;  %v1692_v39 = vadd.f32 %v4714_v28, %v1674_v38 }
 0x5ad   : > { %v3779_v54 = vadd.f32 %v1605_v46, %v4703_v2 }
 0x5ae   : > { %v2685_v50 = vmul.f32 -1.442695, %v3778_v41 }
 0x5af   : > { %v2686_v58 = vmul.f32 -1.442695, %v3779_v54 }
 0x5b0   : > { %3939 = vpow2.f32 %v2685_v50 }
 0x5b1   : > { %3941 = vpow2.f32 %v2686_v58 }
 0x5ba   : > { %v3940_v62 = vpop.eup %3939 }
 0x5bb   : > { %v1686_v43 = vadd.f32 1.0, %v3940_v62  ;;  %v3942_v1 = vpop.eup %3941 }
 0x5bc   : > { %v1687_v5 = vadd.f32 1.0, %v3942_v1 }
 0x5bd   : > { %3943 = vrcp.f32 %v1686_v43 }
 0x5be   : > { %3945 = vrcp.f32 %v1687_v5 }
 0x5c7   : > { %v3944_v44 = vpop.eup %3943 }
 0x5c8   : > { %v1693_v6 = vmul.f32 %v3944_v44, %v1692_v39  ;;  %v3946_v11 = vpop.eup %3945 }
 0x5c9   : > { %v1696_v13 = vsub.f32 1.0, %v3946_v11  ;;  %v1698_v20 = vmul.f32 %v3946_v11, %v1536_v35  ;;  %v493_v11 = vld [vmem:[#allocation8 + $0x18] sm:$0xff] }
 0x5ca   : > { %v1694_v7 = vadd.f32 %v1693_v6, %v4699_v60 }
 0x5cc   : > { %3947 = vtanh.f32 %v1694_v7  ;;  %v496_v7 = vld [vmem:[#allocation8 + $0x30] sm:$0xff] }
 0x5d6   : > { %v3948_v17 = vpop.eup %3947 }
 0x5d7   : > { %v1697_v18 = vmul.f32 %v3948_v17, %v1696_v13  ;;  %v499_v17 = vld [vmem:[#allocation8 + $0x48] sm:$0xff] }
 0x5d9   : > { %v1699_v24 = vadd.f32 %v1698_v20, %v1697_v18  ;;  %v492_v18 = vld [vmem:[#allocation8 + $0x10] sm:$0xff]  ;;  %v498_v20 = vld [vmem:[#allocation8 + $0x40] sm:$0xff] }
 0x5db   : > { %1765 = vmatmul.mubr.f32.vlgmr.msra.gmra.mrb[10].mxu0 %v1699_v24  ;;  %3087 = vmatmul.mubr.f32.vlgmr.msra.gmra.mrb[18].mxu1 %v1699_v24 }
 0x5dc   : > { %3541 = vmatpush1.bf16.msra.mxu0 %v4528_v15  ;;  %3572 = vmatpush3.bf16.msra.mxu1 %v4552_v40 }
 0x5dd   : > { %3543 = vmatprep.subr.bf16.mxu0 %v4531_v16  ;;  %3573 = vmatprep.subr.bf16.mxu1 %v4221_v48 }
 0x5de   : > { %1927 = vmatprep.mubr.f32.mxu0 %v4220_v0  ;;  %3121 = vmatprep.mubr.msk.f32.mxu1 %vm4222_vm1, %v4220_v0 }
 0x5e0   : > { %3545 = vmatpush1.bf16.msra.mxu0 %v4537_v22  ;;  %3575 = vmatpush3.bf16.msra.mxu1 %v4566_v51 }
 0x5e1   : > { %3547 = vmatprep.subr.bf16.mxu0 %v4540_v23  ;;  %3576 = vmatprep.subr.bf16.mxu1 %v4221_v48 }
 0x5e4   : > { %3549 = vmatpush1.bf16.msra.mxu0 %v4546_v31  ;;  %3578 = vmatpush3.bf16.msra.mxu1 %v4580_v61 }
 0x5e5   : > { %3551 = vmatprep.subr.bf16.mxu0 %v4549_v33  ;;  %3579 = vmatprep.subr.bf16.mxu1 %v4221_v48 }
 0x5e8   : > { %3553 = vmatpush1.bf16.msra.mxu0 %v4557_v42  ;;  %3581 = vmatpush3.bf16.msra.mxu1 %v4594_v8 }
 0x5e9   : > { %3555 = vmatprep.subr.bf16.mxu0 %v4560_v45  ;;  %3582 = vmatprep.subr.bf16.mxu1 %v4221_v48 }
 0x5ec   : > { %3557 = vmatpush1.bf16.msra.mxu0 %v4571_v53  ;;  %3584 = vmatpush3.bf16.msra.mxu1 %v4608_v19 }
 0x5ed   : > { %3559 = vmatprep.subr.bf16.mxu0 %v4574_v56  ;;  %3585 = vmatprep.subr.bf16.mxu1 %v4221_v48 }
 0x5f0   : > { %3561 = vmatpush1.bf16.msra.mxu0 %v4585_v63  ;;  %3587 = vmatpush3.bf16.msra.mxu1 %v4620_v26 }
 0x5f1   : > { %3563 = vmatprep.subr.bf16.mxu0 %v4588_v3  ;;  %3588 = vmatprep.subr.bf16.mxu1 %v4221_v48 }
 0x5f4   : > { %3565 = vmatpush1.bf16.msra.mxu0 %v4599_v10  ;;  %3590 = vmatpush3.bf16.msra.mxu1 %v4630_v29 }
 0x5f5   : > { %3567 = vmatprep.subr.bf16.mxu0 %v4602_v14  ;;  %3591 = vmatprep.subr.bf16.mxu1 %v4221_v48 }
 0x5f8   : > { %3569 = vmatpush1.bf16.msra.mxu0 %v4613_v21  ;;  %3593 = vmatpush3.bf16.msra.mxu1 %v4639_v34 }
 0x5f9   : > { %3595 = vmatprep.subr.bf16.mxu0 %v4526_v12  ;;  %3626 = vmatprep.subr.bf16.mxu1 %v4221_v48 }
 0x6ae   : > { %v1766_v60 = vpop.f32.mrb[10].mxu0  ;;  %v1837_v25 = vpop.f32.mrb[18].mxu1 }
 0x6af   : > { %v3780_v27 = vadd.f32 %v1766_v60, %v4697_v59  ;;  %v1768_v30 = vpop.f32.mrb[11].mxu0  ;;  %v3088_v32 = vpop.f32.mrb[19].mxu1  ;;  %v1855_v12 = vadd.f32 %v4714_v28, %v1837_v25  ;;  %v3684_v60 = vpack.c.bf16 %v498_v20, %v492_v18  ;;  %v503_v25 = vld [vmem:[#allocation8 + $0x68] sm:$0xff]  ;;  %v550_v20 = vld [vmem:[#allocation8 + $0x1e0] sm:$0xff] }
 0x6b0   : > { %v3781_v47 = vadd.f32 %v1768_v30, %v4703_v2  ;;  %v502_v32 = vld [vmem:[#allocation8 + $0x60] sm:$0xff] }
 0x6b1   : > { %v2687_v35 = vmul.f32 -1.442695, %v3780_v27  ;;  %v509_v27 = vld [vmem:[#allocation8 + $0x98] sm:$0xff] }
 0x6b2   : > { %v2688_v38 = vmul.f32 -1.442695, %v3781_v47  ;;  %v3654_v30 = vpack.c.bf16 %v509_v27, %v503_v25  ;;  %v505_v47 = vld [vmem:[#allocation8 + $0x78] sm:$0xff]  ;;  %v559_v27 = vld [vmem:[#allocation8 + $0x228] sm:$0xff] }
 0x6b3   : > { %3949 = vpow2.f32 %v2687_v35  ;;  %v508_v35 = vld [vmem:[#allocation8 + $0x90] sm:$0xff] }
 0x6b4   : > { %3951 = vpow2.f32 %v2688_v38  ;;  %v3656_v38 = vpack.c.bf16 %v508_v35, %v502_v32  ;;  %v558_v32 = vld [vmem:[#allocation8 + $0x220] sm:$0xff] }
 0x6bd   : > { %v3950_v41 = vpop.eup %3949 }
 0x6be   : > { %v1849_v46 = vadd.f32 1.0, %v3950_v41  ;;  %v3952_v49 = vpop.eup %3951  ;;  %v511_v41 = vld [vmem:[#allocation8 + $0xa8] sm:$0xff] }
 0x6bf   : > { %v1850_v50 = vadd.f32 1.0, %v3952_v49  ;;  %v510_v49 = vld [vmem:[#allocation8 + $0xa0] sm:$0xff] }
 0x6c0   : > { %3953 = vrcp.f32 %v1849_v46  ;;  %v504_v46 = vld [vmem:[#allocation8 + $0x70] sm:$0xff] }
 0x6c1   : > { %3955 = vrcp.f32 %v1850_v50  ;;  %v3686_v50 = vpack.c.bf16 %v511_v41, %v505_v47  ;;  %v569_v41 = vld [vmem:[#allocation8 + $0x278] sm:$0xff] }
 0x6ca   : > { %v3954_v54 = vpop.eup %3953 }
 0x6cb   : > { %v1856_v58 = vmul.f32 %v3954_v54, %v1855_v12  ;;  %v3956_v43 = vpop.eup %3955  ;;  %v3688_v12 = vpack.c.bf16 %v510_v49, %v504_v46  ;;  %v515_v54 = vld [vmem:[#allocation8 + $0xc8] sm:$0xff]  ;;  %v562_v46 = vld [vmem:[#allocation8 + $0x240] sm:$0xff] }
 0x6cc   : > { %v1859_v1 = vsub.f32 1.0, %v3956_v43  ;;  %v1861_v44 = vmul.f32 %v3956_v43, %v1699_v24  ;;  %v3682_v24 = vpack.c.bf16 %v499_v17, %v493_v11  ;;  %v514_v43 = vld [vmem:[#allocation8 + $0xc0] sm:$0xff]  ;;  %v557_v17 = vld [vmem:[#allocation8 + $0x218] sm:$0xff] }
 0x6cd   : > { %v1857_v62 = vadd.f32 %v1856_v58, %v4693_v57  ;;  %v497_v57 = vld [vmem:[#allocation8 + $0x38] sm:$0xff] }
 0x6ce   : > { %v521_v58 = vld [vmem:[#allocation8 + $0xf8] sm:$0xff] }
 0x6cf   : > { %3957 = vtanh.f32 %v1857_v62  ;;  %v3658_v62 = vpack.c.bf16 %v521_v58, %v515_v54  ;;  %v571_v54 = vld [vmem:[#allocation8 + $0x288] sm:$0xff] }
 0x6d9   : > { %v3958_v5 = vpop.eup %3957 }
 0x6da   : > { %v1860_v39 = vmul.f32 %v3958_v5, %v1859_v1  ;;  %v520_v1 = vld [vmem:[#allocation8 + $0xf0] sm:$0xff]  ;;  %v517_v5 = vld [vmem:[#allocation8 + $0xd8] sm:$0xff] }
 0x6dc   : > { %v1862_v6 = vadd.f32 %v1861_v44, %v1860_v39  ;;  %v3660_v39 = vpack.c.bf16 %v520_v1, %v514_v43  ;;  %v523_v44 = vld [vmem:[#allocation8 + $0x108] sm:$0xff]  ;;  %v564_v43 = vld [vmem:[#allocation8 + $0x250] sm:$0xff]  ;;  %v570_v1 = vld [vmem:[#allocation8 + $0x280] sm:$0xff] }
 0x6de   : > { %1928 = vmatmul.mubr.f32.vlgmr.msra.gmra.mrb[12].mxu0 %v1862_v6  ;;  %3122 = vmatmul.mubr.f32.vlgmr.msra.gmra.mrb[20].mxu1 %v1862_v6 }
 0x6df   : > { %3597 = vmatpush1.bf16.msra.mxu0 %v4528_v15  ;;  %3628 = vmatpush3.bf16.msra.mxu1 %v4552_v40 }
 0x6e0   : > { %3599 = vmatprep.subr.bf16.mxu0 %v4531_v16  ;;  %3629 = vmatprep.subr.bf16.mxu1 %v4221_v48 }
 0x6e1   : > { %2090 = vmatprep.mubr.f32.mxu0 %v4220_v0  ;;  %3156 = vmatprep.mubr.msk.f32.mxu1 %vm4222_vm1, %v4220_v0 }
 0x6e3   : > { %3601 = vmatpush1.bf16.msra.mxu0 %v4537_v22  ;;  %3631 = vmatpush3.bf16.msra.mxu1 %v4566_v51 }
 0x6e4   : > { %3603 = vmatprep.subr.bf16.mxu0 %v4540_v23  ;;  %3632 = vmatprep.subr.bf16.mxu1 %v4221_v48 }
 0x6e7   : > { %3605 = vmatpush1.bf16.msra.mxu0 %v4546_v31  ;;  %3634 = vmatpush3.bf16.msra.mxu1 %v4580_v61 }
 0x6e8   : > { %3607 = vmatprep.subr.bf16.mxu0 %v4549_v33  ;;  %3635 = vmatprep.subr.bf16.mxu1 %v4221_v48 }
 0x6eb   : > { %3609 = vmatpush1.bf16.msra.mxu0 %v4557_v42  ;;  %3637 = vmatpush3.bf16.msra.mxu1 %v4594_v8 }
 0x6ec   : > { %3611 = vmatprep.subr.bf16.mxu0 %v4560_v45  ;;  %3638 = vmatprep.subr.bf16.mxu1 %v4221_v48 }
 0x6ef   : > { %3613 = vmatpush1.bf16.msra.mxu0 %v4571_v53  ;;  %3640 = vmatpush3.bf16.msra.mxu1 %v4608_v19 }
 0x6f0   : > { %3615 = vmatprep.subr.bf16.mxu0 %v4574_v56  ;;  %3641 = vmatprep.subr.bf16.mxu1 %v4221_v48 }
 0x6f3   : > { %3617 = vmatpush1.bf16.msra.mxu0 %v4585_v63  ;;  %3643 = vmatpush3.bf16.msra.mxu1 %v4620_v26 }
 0x6f4   : > { %3619 = vmatprep.subr.bf16.mxu0 %v4588_v3  ;;  %3644 = vmatprep.subr.bf16.mxu1 %v4221_v48 }
 0x6f7   : > { %3621 = vmatpush1.bf16.msra.mxu0 %v4599_v10  ;;  %3646 = vmatpush3.bf16.msra.mxu1 %v4630_v29 }
 0x6f8   : > { %3623 = vmatprep.subr.bf16.mxu0 %v4602_v14  ;;  %3647 = vmatprep.subr.bf16.mxu1 %v4221_v48 }
 0x6fb   : > { %3625 = vmatpush1.bf16.msra.mxu0 %v4613_v21  ;;  %3649 = vmatpush3.bf16.msra.mxu1 %v4639_v34  ;;  %v491_v34 = vld [vmem:[#allocation8 + $0x8] sm:$0xff] }
 0x6fc   : > { %3683 = vmatprep.subr.bf16.mxu1 %v3682_v24  ;;  %v556_v24 = vld [vmem:[#allocation8 + $0x210] sm:$0xff] }
 0x6fd   : > { %v3672_v25 = vpack.c.bf16 %v556_v24, %v550_v20  ;;  %v500_v20 = vld [vmem:[#allocation8 + $0x50] sm:$0xff] }
 0x7b1   : > { %v1929_v15 = vpop.f32.mrb[12].mxu0  ;;  %v2000_v16 = vpop.f32.mrb[20].mxu1 }
 0x7b2   : > { %v3782_v22 = vadd.f32 %v1929_v15, %v4697_v59  ;;  %v1931_v23 = vpop.f32.mrb[13].mxu0  ;;  %v3123_v31 = vpop.f32.mrb[21].mxu1  ;;  %v2018_v61 = vadd.f32 %v4714_v28, %v2000_v16  ;;  %v3650_v28 = vpack.c.bf16 %v497_v57, %v491_v34  ;;  %v522_v15 = vld [vmem:[#allocation8 + $0x100] sm:$0xff]  ;;  %v3690_v16 = vpack.c.bf16 %v523_v44, %v517_v5  ;;  %v547_v57 = vld [vmem:[#allocation8 + $0x1c8] sm:$0xff]  ;;  %v581_v44 = vld [vmem:[#allocation8 + $0x2d8] sm:$0xff] }
 0x7b3   : > { %v3783_v40 = vadd.f32 %v1931_v23, %v4703_v2  ;;  %v527_v23 = vld [vmem:[#allocation8 + $0x128] sm:$0xff]  ;;  %v533_v31 = vld [vmem:[#allocation8 + $0x158] sm:$0xff] }
 0x7b4   : > { %v2689_v33 = vmul.f32 -1.442695, %v3782_v22  ;;  %3651 = vmatprep.subr.bf16.mxu0 %v3650_v28  ;;  %v540_v28 = vld [vmem:[#allocation8 + $0x190] sm:$0xff]  ;;  %v575_v5 = vld [vmem:[#allocation8 + $0x2a8] sm:$0xff] }
 0x7b5   : > { %v2690_v42 = vmul.f32 -1.442695, %v3783_v40  ;;  %v526_v40 = vld [vmem:[#allocation8 + $0x120] sm:$0xff] }
 0x7b6   : > { %3959 = vpow2.f32 %v2689_v33  ;;  %v3662_v33 = vpack.c.bf16 %v533_v31, %v527_v23  ;;  %v583_v23 = vld [vmem:[#allocation8 + $0x2e8] sm:$0xff]  ;;  %v576_v31 = vld [vmem:[#allocation8 + $0x2b0] sm:$0xff] }
 0x7b7   : > { %3961 = vpow2.f32 %v2690_v42  ;;  %v532_v42 = vld [vmem:[#allocation8 + $0x150] sm:$0xff] }
 0x7c0   : > { %v3960_v45 = vpop.eup %3959 }
 0x7c1   : > { %v2012_v51 = vadd.f32 1.0, %v3960_v45  ;;  %v3962_v53 = vpop.eup %3961  ;;  %v529_v45 = vld [vmem:[#allocation8 + $0x138] sm:$0xff] }
 0x7c2   : > { %v2013_v56 = vadd.f32 1.0, %v3962_v53  ;;  %v535_v53 = vld [vmem:[#allocation8 + $0x168] sm:$0xff] }
 0x7c3   : > { %3963 = vrcp.f32 %v2012_v51  ;;  %v3664_v51 = vpack.c.bf16 %v532_v42, %v526_v40  ;;  %v582_v42 = vld [vmem:[#allocation8 + $0x2e0] sm:$0xff] }
 0x7c4   : > { %3965 = vrcp.f32 %v2013_v56  ;;  %v528_v56 = vld [vmem:[#allocation8 + $0x130] sm:$0xff] }
 0x7cd   : > { %v3964_v63 = vpop.eup %3963 }
 0x7ce   : > { %v2019_v3 = vmul.f32 %v3964_v63, %v2018_v61  ;;  %v3966_v10 = vpop.eup %3965  ;;  %v534_v61 = vld [vmem:[#allocation8 + $0x160] sm:$0xff]  ;;  %v3694_v63 = vpack.c.bf16 %v535_v53, %v529_v45  ;;  %v495_v45 = vld [vmem:[#allocation8 + $0x28] sm:$0xff] }
 0x7cf   : > { %v2022_v14 = vsub.f32 1.0, %v3966_v10  ;;  %v2024_v26 = vmul.f32 %v3966_v10, %v1862_v6  ;;  %v516_v6 = vld [vmem:[#allocation8 + $0xd0] sm:$0xff]  ;;  %v545_v10 = vld [vmem:[#allocation8 + $0x1b8] sm:$0xff] }
 0x7d0   : > { %v2020_v8 = vadd.f32 %v2019_v3, %v4708_v9  ;;  %v490_v9 = vld [vmem:[#allocation8] sm:$0xff]  ;;  %v3692_v22 = vpack.c.bf16 %v522_v15, %v516_v6  ;;  %v3696_v3 = vpack.c.bf16 %v534_v61, %v528_v56  ;;  %v580_v15 = vld [vmem:[#allocation8 + $0x2d0] sm:$0xff]  ;;  %v3712_v56 = vpack.c.bf16 %v582_v42, %v576_v31  ;;  %v561_v31 = vld [vmem:[#allocation8 + $0x238] sm:$0xff] }
 0x7d1   : > { %v3652_v13 = vpack.c.bf16 %v496_v7, %v490_v9  ;;  %v546_v9 = vld [vmem:[#allocation8 + $0x1c0] sm:$0xff]  ;;  %v560_v42 = vld [vmem:[#allocation8 + $0x230] sm:$0xff] }
 0x7d2   : > { %3967 = vtanh.f32 %v2020_v8  ;;  %v539_v8 = vld [vmem:[#allocation8 + $0x188] sm:$0xff]  ;;  %v3700_v11 = vpack.c.bf16 %v546_v9, %v540_v28  ;;  %v574_v6 = vld [vmem:[#allocation8 + $0x2a0] sm:$0xff]  ;;  %v3989_v9 = vld [vmem:[%s5047_s4] ss:$0 sm:$0xff] }
 0x7dc   : > { %v3968_v19 = vpop.eup %3967 }
 0x7dd   : > { %v2023_v21 = vmul.f32 %v3968_v19, %v2022_v14  ;;  %v3666_v14 = vpack.c.bf16 %v545_v10, %v539_v8  ;;  %v538_v19 = vld [vmem:[#allocation8 + $0x180] sm:$0xff] }
 0x7df   : > { %v4949_v29 = vadd.f32 %v2024_v26, %v2023_v21  ;;  %v544_v21 = vld [vmem:[#allocation8 + $0x1b0] sm:$0xff]  ;;  %v541_v26 = vld [vmem:[#allocation8 + $0x198] sm:$0xff] }
 0x7e0   : > { %v3668_v34 = vpack.c.bf16 %v544_v21, %v538_v19  ;;  %v3698_v7 = vpack.c.bf16 %v547_v57, %v541_v26 }
 0x7e1   : > { %2091 = vmatmul.mubr.f32.vlgmr.msra.gmra.mrb[14].mxu0 %v4949_v29  ;;  %3157 = vmatmul.mubr.f32.vlgmr.msra.gmra.mrb[22].mxu1 %v4949_v29 }
 0x7e2   : > { %2253 = vmatprep.mubr.f32.mxu0 %v4220_v0  ;;  %2324 = vmatprep.mubr.f32.mxu1 %v4220_v0 }
 0x7e3   : > { %3653 = vmatpush1.bf16.msra.mxu0 %v3652_v13  ;;  %3685 = vmatpush1.bf16.msra.mxu1 %v3684_v60  ;;  %v551_v13 = vld [vmem:[#allocation8 + $0x1e8] sm:$0xff]  ;;  %v553_v60 = vld [vmem:[#allocation8 + $0x1f8] sm:$0xff] }
 0x7e4   : > { %3655 = vmatprep.subr.bf16.mxu0 %v3654_v30  ;;  %3687 = vmatprep.subr.bf16.mxu1 %v3686_v50  ;;  %v3670_v18 = vpack.c.bf16 %v557_v17, %v551_v13  ;;  %v552_v30 = vld [vmem:[#allocation8 + $0x1f0] sm:$0xff]  ;;  %v3702_v35 = vpack.c.bf16 %v559_v27, %v553_v60  ;;  %v507_v60 = vld [vmem:[#allocation8 + $0x88] sm:$0xff] }
 0x7e5   : > { %v3704_v47 = vpack.c.bf16 %v558_v32, %v552_v30  ;;  %v568_v50 = vld [vmem:[#allocation8 + $0x270] sm:$0xff] }
 0x7e6   : > { %v3676_v58 = vpack.c.bf16 %v568_v50, %v562_v46  ;;  %v519_v46 = vld [vmem:[#allocation8 + $0xe8] sm:$0xff] }
 0x7e7   : > { %3657 = vmatpush1.bf16.msra.mxu0 %v3656_v38  ;;  %3689 = vmatpush1.bf16.msra.mxu1 %v3688_v12  ;;  %v563_v38 = vld [vmem:[#allocation8 + $0x248] sm:$0xff]  ;;  %v565_v12 = vld [vmem:[#allocation8 + $0x258] sm:$0xff] }
 0x7e8   : > { %3659 = vmatprep.subr.bf16.mxu0 %v3658_v62  ;;  %3691 = vmatprep.subr.bf16.mxu1 %v3690_v16  ;;  %v3674_v49 = vpack.c.bf16 %v569_v41, %v563_v38  ;;  %v3706_v62 = vpack.c.bf16 %v571_v54, %v565_v12  ;;  %v3678_v16 = vpack.c.bf16 %v581_v44, %v575_v5  ;;  %v506_v38 = vld [vmem:[#allocation8 + $0x80] sm:$0xff]  ;;  %v512_v41 = vld [vmem:[#allocation8 + $0xb0] sm:$0xff]  ;;  %v531_v54 = vld [vmem:[#allocation8 + $0x148] sm:$0xff] }
 0x7e9   : > { %v518_v12 = vld [vmem:[#allocation8 + $0xe0] sm:$0xff]  ;;  %v536_v5 = vld [vmem:[#allocation8 + $0x170] sm:$0xff]  ;;  %v549_v44 = vld [vmem:[#allocation8 + $0x1d8] sm:$0xff] }
 0x7eb   : > { %3661 = vmatpush1.bf16.msra.mxu0 %v3660_v39  ;;  %3693 = vmatpush1.bf16.msra.mxu1 %v3692_v22  ;;  %v3708_v39 = vpack.c.bf16 %v570_v1, %v564_v43  ;;  %v577_v22 = vld [vmem:[#allocation8 + $0x2b8] sm:$0xff]  ;;  %v530_v1 = vld [vmem:[#allocation8 + $0x140] sm:$0xff] }
 0x7ec   : > { %3663 = vmatprep.subr.bf16.mxu0 %v3662_v33  ;;  %3695 = vmatprep.subr.bf16.mxu1 %v3694_v63  ;;  %v3680_v33 = vpack.c.bf16 %v580_v15, %v574_v6  ;;  %v3710_v40 = vpack.c.bf16 %v583_v23, %v577_v22  ;;  %v3728_v6 = vpack.c.bf16 %v536_v5, %v530_v1  ;;  %v548_v22 = vld [vmem:[#allocation8 + $0x1d0] sm:$0xff]  ;;  %v555_v23 = vld [vmem:[#allocation8 + $0x208] sm:$0xff] }
 0x7ef   : > { %3665 = vmatpush1.bf16.msra.mxu0 %v3664_v51  ;;  %3697 = vmatpush1.bf16.msra.mxu1 %v3696_v3  ;;  %v501_v51 = vld [vmem:[#allocation8 + $0x58] sm:$0xff] }
 0x7f0   : > { %3667 = vmatprep.subr.bf16.mxu0 %v3666_v14  ;;  %3699 = vmatprep.subr.bf16.mxu1 %v3698_v7  ;;  %v3714_v53 = vpack.c.bf16 %v501_v51, %v495_v45  ;;  %v567_v45 = vld [vmem:[#allocation8 + $0x268] sm:$0xff]  ;;  %v573_v51 = vld [vmem:[#allocation8 + $0x298] sm:$0xff] }
 0x7f3   : > { %3669 = vmatpush1.bf16.msra.mxu0 %v3668_v34  ;;  %3701 = vmatpush1.bf16.msra.mxu1 %v3700_v11 }
 0x7f4   : > { %3671 = vmatprep.subr.bf16.mxu0 %v3670_v18  ;;  %3703 = vmatprep.subr.bf16.mxu1 %v3702_v35  ;;  %v494_v18 = vld [vmem:[#allocation8 + $0x20] sm:$0xff] }
 0x7f5   : > { %v3716_v32 = vpack.c.bf16 %v500_v20, %v494_v18  ;;  %v594_v18 = vld [vmem:[#allocation10 + $0x38] sm:$0xff] }
 0x7f7   : > { %3673 = vmatpush1.bf16.msra.mxu0 %v3672_v25  ;;  %3705 = vmatpush1.bf16.msra.mxu1 %v3704_v47  ;;  %v513_v25 = vld [vmem:[#allocation8 + $0xb8] sm:$0xff] }
 0x7f8   : > { %3675 = vmatprep.subr.bf16.mxu0 %v3674_v49  ;;  %3707 = vmatprep.subr.bf16.mxu1 %v3706_v62  ;;  %v3718_v47 = vpack.c.bf16 %v513_v25, %v507_v60  ;;  %v525_v49 = vld [vmem:[#allocation8 + $0x118] sm:$0xff]  ;;  %v596_v60 = vld [vmem:[#allocation10 + $0x48] sm:$0xff] }
 0x7f9   : > { %v3722_v50 = vpack.c.bf16 %v525_v49, %v519_v46  ;;  %v601_v46 = vld [vmem:[#allocation10 + $0x70] sm:$0xff]  ;;  %v602_v49 = vld [vmem:[#allocation10 + $0x78] sm:$0xff] }
 0x7fb   : > { %3677 = vmatpush1.bf16.msra.mxu0 %v3676_v58  ;;  %3709 = vmatpush1.bf16.msra.mxu1 %v3708_v39  ;;  %v537_v58 = vld [vmem:[#allocation8 + $0x178] sm:$0xff]  ;;  %v543_v39 = vld [vmem:[#allocation8 + $0x1a8] sm:$0xff] }
 0x7fc   : > { %3679 = vmatprep.subr.bf16.mxu0 %v3678_v16  ;;  %3711 = vmatprep.subr.bf16.mxu1 %v3710_v40  ;;  %v3726_v43 = vpack.c.bf16 %v537_v58, %v531_v54  ;;  %v3730_v15 = vpack.c.bf16 %v549_v44, %v543_v39  ;;  %v542_v16 = vld [vmem:[#allocation8 + $0x1a0] sm:$0xff] }
 0x7fd   : > { %v554_v40 = vld [vmem:[#allocation8 + $0x200] sm:$0xff] }
 0x7ff   : > { %3681 = vmatpush1.bf16.msra.mxu0 %v3680_v33  ;;  %3713 = vmatpush1.bf16.msra.mxu1 %v3712_v56  ;;  %v3734_v33 = vpack.c.bf16 %v561_v31, %v555_v23  ;;  %v3738_v56 = vpack.c.bf16 %v573_v51, %v567_v45 }
 0x800   : > { %3715 = vmatprep.subr.bf16.mxu0 %v3714_v53  ;;  %3746 = vmatprep.subr.bf16.mxu1 %v4221_v48  ;;  %v3736_v53 = vpack.c.bf16 %v560_v42, %v554_v40 }
 0x8b4   : > { %v2092_v61 = vpop.f32.mrb[14].mxu0  ;;  %v2163_v63 = vpop.f32.mrb[22].mxu1 }
 0x8b5   : > { %v3784_v3 = vadd.f32 %v2092_v61, %v4697_v59  ;;  %v2094_v8 = vpop.f32.mrb[15].mxu0  ;;  %v3158_v10 = vpop.f32.mrb[23].mxu1  ;;  %v2181_v7 = vadd.f32 %v3989_v9, %v2163_v63  ;;  %v566_v61 = vld [vmem:[#allocation8 + $0x260] sm:$0xff]  ;;  %v572_v63 = vld [vmem:[#allocation8 + $0x290] sm:$0xff] }
 0x8b6   : > { %v3785_v19 = vadd.f32 %v2094_v8, %v4703_v2  ;;  %v585_v8 = vld [vmem:[#allocation8 + $0x2f8] sm:$0xff]  ;;  %v3740_v10 = vpack.c.bf16 %v572_v63, %v566_v61  ;;  %v589_v9 = vld [vmem:[#allocation10 + $0x10] sm:$0xff] }
 0x8b7   : > { %v2691_v14 = vmul.f32 -1.442695, %v3784_v3  ;;  %v579_v3 = vld [vmem:[#allocation8 + $0x2c8] sm:$0xff] }
 0x8b8   : > { %v2692_v21 = vmul.f32 -1.442695, %v3785_v19  ;;  %v578_v19 = vld [vmem:[#allocation8 + $0x2c0] sm:$0xff] }
 0x8b9   : > { %3969 = vpow2.f32 %v2691_v14  ;;  %v3742_v14 = vpack.c.bf16 %v585_v8, %v579_v3  ;;  %v2695_v3 = vld [vmem:[%s5052_s9] ss:$0 sm:$0xff] }
 0x8ba   : > { %3971 = vpow2.f32 %v2692_v21  ;;  %v584_v21 = vld [vmem:[#allocation8 + $0x2f0] sm:$0xff] }
 0x8c3   : > { %v3970_v26 = vpop.eup %3969 }
 0x8c4   : > { %v2175_v34 = vadd.f32 1.0, %v3970_v26  ;;  %v3972_v57 = vpop.eup %3971  ;;  %v3744_v26 = vpack.c.bf16 %v584_v21, %v578_v19 }
 0x8c5   : > { %v2176_v28 = vadd.f32 1.0, %v3972_v57  ;;  %v588_v57 = vld [vmem:[#allocation10 + $0x8] sm:$0xff] }
 0x8c6   : > { %3973 = vrcp.f32 %v2175_v34  ;;  %v587_v34 = vld [vmem:[#allocation10] sm:$0xff] }
 0x8c7   : > { %3975 = vrcp.f32 %v2176_v28  ;;  %v3747_v28 = vpack.c.bf16 %v588_v57, %v587_v34 }
 0x8d0   : > { %v3974_v11 = vpop.eup %3973 }
 0x8d1   : > { %v2182_v59 = vmul.f32 %v3974_v11, %v2181_v7  ;;  %v3976_v2 = vpop.eup %3975  ;;  %v590_v7 = vld [vmem:[#allocation10 + $0x18] sm:$0xff] }
 0x8d2   : > { %v2185_v17 = vsub.f32 1.0, %v3976_v2  ;;  %v2187_v30 = vmul.f32 %v3976_v2, %v4949_v29  ;;  %v524_v29 = vld [vmem:[#allocation8 + $0x110] sm:$0xff]  ;;  %v3750_v11 = vpack.c.bf16 %v590_v7, %v589_v9 }
 0x8d3   : > { %v2183_v13 = vadd.f32 %v2182_v59, %v4705_v4  ;;  %v3720_v4 = vpack.c.bf16 %v512_v41, %v506_v38  ;;  %v3724_v62 = vpack.c.bf16 %v524_v29, %v518_v12  ;;  %v591_v59 = vld [vmem:[#allocation10 + $0x20] sm:$0xff]  ;;  %v600_v38 = vld [vmem:[#allocation10 + $0x68] sm:$0xff] }
 0x8d5   : > { %3977 = vtanh.f32 %v2183_v13  ;;  %v592_v13 = vld [vmem:[#allocation10 + $0x28] sm:$0xff] }
 0x8d6   : > { %v3753_v2 = vpack.c.bf16 %v592_v13, %v591_v59 }
 0x8df   : > { %v3978_v24 = vpop.eup %3977 }
 0x8e0   : > { %v2186_v27 = vmul.f32 %v3978_v24, %v2185_v17  ;;  %v593_v17 = vld [vmem:[#allocation10 + $0x30] sm:$0xff]  ;;  %v595_v24 = vld [vmem:[#allocation10 + $0x40] sm:$0xff] }
 0x8e1   : > { %v3756_v20 = vpack.c.bf16 %v594_v18, %v593_v17  ;;  %v3759_v25 = vpack.c.bf16 %v596_v60, %v595_v24 }
 0x8e2   : > { %v4963_v35 = vadd.f32 %v2187_v30, %v2186_v27  ;;  %v597_v27 = vld [vmem:[#allocation10 + $0x50] sm:$0xff]  ;;  %v598_v30 = vld [vmem:[#allocation10 + $0x58] sm:$0xff] }
 0x8e4   : > { %2254 = vmatmul.mubr.f32.vlgmr.msra.gmra.mrb[16].mxu0 %v4963_v35  ;;  %2325 = vmatmul.mubr.f32.vlgmr.msra.gmra.mrb[24].mxu1 %v4963_v35 }
 0x8e5   : > { %3717 = vmatpush1.bf16.msra.mxu0 %v3716_v32  ;;  %2395 = vmatprep.mubr.f32.mxu0 %v4220_v0  ;;  %v3762_v32 = vpack.c.bf16 %v598_v30, %v597_v27 }
 0x8e6   : > { %3719 = vmatprep.subr.bf16.mxu0 %v3718_v47  ;;  %3191 = vmatprep.mubr.msk.f32.mxu1 %vm4222_vm1, %v4220_v0  ;;  %v3732_v0 = vpack.c.bf16 %v548_v22, %v542_v16  ;;  %v599_v47 = vld [vmem:[#allocation10 + $0x60] sm:$0xff] }
 0x8e7   : > { %3748 = vmatpush3.bf16.msra.mxu1 %v3747_v28  ;;  %v3765_v41 = vpack.c.bf16 %v600_v38, %v599_v47 }
 0x8e8   : > { %3749 = vmatprep.subr.bf16.mxu1 %v4221_v48 }
 0x8e9   : > { %3721 = vmatpush1.bf16.msra.mxu0 %v3720_v4  ;;  %v3768_v4 = vpack.c.bf16 %v602_v49, %v601_v46 }
 0x8ea   : > { %3723 = vmatprep.subr.bf16.mxu0 %v3722_v50  ;;  %v586_v50 = vld [vmem:[%s5049_s6] sm:$0x7] }
 0x8eb   : > { %3751 = vmatpush3.bf16.msra.mxu1 %v3750_v11  ;;  %v2406_v12 = vrot.slane %v586_v50, %v629_v52  ;;  %v2414_v52 = vrot.slane %v586_v50, %v637_v37 }
 0x8ec   : > { %3752 = vmatprep.subr.bf16.mxu1 %v4221_v48 }
 0x8ed   : > { %3725 = vmatpush1.bf16.msra.mxu0 %v3724_v62 }
 0x8ee   : > { %3727 = vmatprep.subr.bf16.mxu0 %v3726_v43 }
 0x8ef   : > { %3754 = vmatpush3.bf16.msra.mxu1 %v3753_v2 }
 0x8f0   : > { %3755 = vmatprep.subr.bf16.mxu1 %v4221_v48 }
 0x8f1   : > { %3729 = vmatpush1.bf16.msra.mxu0 %v3728_v6 }
 0x8f2   : > { %3731 = vmatprep.subr.bf16.mxu0 %v3730_v15  ;;  %v2660_v15 = vld [vmem:[%s5050_s7] ss:$0 sm:$0xff] }
 0x8f3   : > { %3757 = vmatpush3.bf16.msra.mxu1 %v3756_v20 }
 0x8f4   : > { %3758 = vmatprep.subr.bf16.mxu1 %v4221_v48 }
 0x8f5   : > { %3733 = vmatpush1.bf16.msra.mxu0 %v3732_v0 }
 0x8f6   : > { %3735 = vmatprep.subr.bf16.mxu0 %v3734_v33 }
 0x8f7   : > { %3760 = vmatpush3.bf16.msra.mxu1 %v3759_v25 }
 0x8f8   : > { %3761 = vmatprep.subr.bf16.mxu1 %v4221_v48 }
 0x8f9   : > { %3737 = vmatpush1.bf16.msra.mxu0 %v3736_v53 }
 0x8fa   : > { %3739 = vmatprep.subr.bf16.mxu0 %v3738_v56 }
 0x8fb   : > { %3763 = vmatpush3.bf16.msra.mxu1 %v3762_v32 }
 0x8fc   : > { %3764 = vmatprep.subr.bf16.mxu1 %v4221_v48 }
 0x8fd   : > { %3741 = vmatpush1.bf16.msra.mxu0 %v3740_v10 }
 0x8fe   : > { %3743 = vmatprep.subr.bf16.mxu0 %v3742_v14 }
 0x8ff   : > { %3766 = vmatpush3.bf16.msra.mxu1 %v3765_v41 }
 0x900   : > { %3767 = vmatprep.subr.bf16.mxu1 %v4221_v48  ;;  %v2410_v48 = vrot.slane %v586_v50, %v633_v55 }
 0x901   : > { %3745 = vmatpush1.bf16.msra.mxu0 %v3744_v26 }
 0x903   : > { %3769 = vmatpush3.bf16.msra.mxu1 %v3768_v4 }
 0x904   : > { %2396 = vmatmul.mubr.f32.vlgmr.msra.gmra.mrb[18].mxu0 %v4963_v35 }
 0x9b7   : > { %v2255_v29 = vpop.f32.mrb[16].mxu0  ;;  %v2326_v54 = vpop.f32.mrb[24].mxu1 }
 0x9b8   : > { %v2418_v58 = vadd.f32 %v2406_v12, %v2255_v29  ;;  %v2257_v62 = vpop.f32.mrb[17].mxu0  ;;  %v2328_v43 = vpop.f32.mrb[25].mxu1  ;;  %v2420_v40 = vadd.f32 %v2414_v52, %v2326_v54 }
 0x9b9   : > { %v2419_v6 = vadd.f32 %v2410_v48, %v2257_v62 }
 0x9ba   : > { %v2421_v1 = vadd.f32 %v2418_v58, %v2328_v43 }
 0x9bc   : > { %v2693_v5 = vmul.f32 -1.442695, %v2421_v1 }
 0x9be   : > { %3979 = vpow2.f32 %v2693_v5 }
 0x9c8   : > { %v3980_v39 = vpop.eup %3979 }
 0x9c9   : > { %v2429_v44 = vadd.f32 1.0, %v3980_v39 }
 0x9cb   : > { %3981 = vrcp.f32 %v2429_v44 }
 0x9d5   : > { %v3982_v0 = vpop.eup %3981 }
 0x9d7   : > { %v2397_v16 = vpop.f32.mrb[18].mxu0 }
 0x9d8   : > { %v2422_v22 = vadd.f32 %v2419_v6, %v2397_v16  ;;  %v2399_v23 = vpop.f32.mrb[19].mxu0 }
 0x9d9   : > { %v2435_v31 = vadd.f32 %v2660_v15, %v2399_v23 }
 0x9da   : > { %v2694_v33 = vmul.f32 -1.442695, %v2422_v22 }
 0x9db   : > { %v2436_v42 = vmul.f32 %v3982_v0, %v2435_v31 }
 0x9dc   : > { %3983 = vpow2.f32 %v2694_v33 }
 0x9dd   : > { %v2437_v55 = vadd.f32 %v2436_v42, %v2420_v40 }
 0x9e6   : > { %v3984_v45 = vpop.eup %3983 }
 0x9e7   : > { %v2430_v51 = vadd.f32 1.0, %v3984_v45 }
 0x9e9   : > { %3985 = vrcp.f32 %v2430_v51 }
 0x9ea   : > { %3987 = vtanh.f32 %v2437_v55 }
 0x9f3   : > { %v3986_v53 = vpop.eup %3985 }
 0x9f4   : > { %v2439_v56 = vsub.f32 1.0, %v3986_v53  ;;  %v3988_v36 = vpop.eup %3987  ;;  %v2441_v61 = vmul.f32 %v3986_v53, %v4963_v35 }
 0x9f6   : > { %v2440_v37 = vmul.f32 %v3988_v36, %v2439_v56 }
 0x9f8   : > { %v2442_v63 = vadd.f32 %v2441_v61, %v2440_v37 }
 0x9fa   : > { %3192 = vmatmul.mubr.f32.vlgmr.msra.gmra.mrb[26].mxu1 %v2442_v63 }
 0xacd   : > { %v2515_v8 = vpop.f32.mrb[26].mxu1 }
 0xace   : > { %v2516_v10 = vadd.f32 %v2695_v3, %v2515_v8  ;;  %v3193_v14 = vpop.f32.mrb[27].mxu1 }
 0xad0   : > { %v2519_v19 = vmax.f32 %v2516_v10, 0.0 }
 0xad2   : > { %2520 = vst [vmem:[%s434_s19] sm:$0xff] %v2519_v19 }
 0xad3   : > { %4145 = shalt.err (!%p4142_p13)
}
 0xad4   : > { %s4146_s23 = scalar_lea.hbm %s4999_s1, 128  ;;  %s4150_s18 = scalar_lea.hbm %s5083_s26, 256 }
 0xad5   : > { %p4147_p9 = scmp.ne.s32.totalorder %s4999_s1, %s4146_s23  ;;  %p4151_p6 = scmp.lt.u32.totalorder %s4999_s1, %s5083_s26 }
 0xad6   : > { %p4152_p4 = scmp.lt.u32.totalorder %s4150_s18, %s4146_s23  ;;  %p4154_p10 = scmp.lt.u32.totalorder %s4146_s23, %s4999_s1 }
 0xad7   : > { %p4148_p0 = pnand %p4147_p9, %p4454_p3 }
 0xad8   : > { %p4153_p8 = por %p4152_p4, %p4151_p6 }
 0xad9   : > { %p4149_p11 = pneg %p4148_p0 }
 0xada   : > { %p4155_p5 = por %p4154_p10, %p4153_p8 }
 0xadc   : > { %p4156_p7 = pnand %p4155_p5, %p4149_p11 }
 0xade   : > { %4159 = shalt.err (!%p4156_p7)
}
 0xadf   : > { %3820 = dma.vmem_to_hbm [thread:$0]  (%p4454_p3), %s5001_s21, 128, %s4999_s1, %s2522_s28  }
 0xae0 PF: > { %s5084_s20 = sld [smem:[#allocation16_spill]]  ;;  %s5085_s12 = sld [smem:[#allocation17_spill]] }
 0xae1   : > { %p5087_p1 = scmp.ge.s32.totalorder %s4206_s16, 2 }
 0xae6   : > { %s2547_s27 = sand.u32 1, %s5084_s20   ;;  %p5086_p12 = scmp.ne.s32.totalorder %s5085_s12, 0 }
 0xae7   : > { %s2548_s17 = scalar_lea.sflag [#allocation4], %s2547_s27 }
 0xae8   : > { %p3840_p2 = pnand %p5087_p1, %p5086_p12 }
 0xaea   : > { %4189 = dma.done.wait (!%p3840_p2), %s2548_s17, 128  }
 0xaeb   : > { %4191 = vsyncadd (!%p3840_p2), %s2548_s17, 4294967168  ;;  %p25_p13 = scmp.ge.s32.totalorder %s4441_s10, 4   ;;  %s5088_s13 = smov %s4198_s14 }
 0xaec   : > { %s5089_s14 = smov %s4202_s15  ;;  %s5090_s15 = smov %s4450_s30 }
 0xaed   : > { %s5091_s16 = smov %s4441_s10  ;;  %27 = sbr.rel (!%p25_p13) target bundleno = 10 (0xa), region = 121 }
 0xaf4   :  { %2553 = vsyncpa [#allocation3], 1 }
 0xaf5   :  { %2555 = vsyncpa [#allocation3 + $0x1], 1 }
 0xaf6   :  { %2556 = vsyncpa [#allocation6], 1 }
 0xaf7   :  { %2557 = vsyncpa [#allocation9], 1 }
 0xaf8   :  { %2558 = vsyncpa [#allocation4], 1 }
 0xaf9   :  { %2560 = vsyncpa [#allocation4 + $0x1], 1 }

</bundles_post_ra>
